<compile_context>
chip_gen: v7x
topology: tpu7x:2x2x1
jax: 0.10.0
libtpu: 0.0.40
codegen_flags: <defaults>
</compile_context>

<pallas_src>
import math

import jax
import jax.numpy as jnp
from jax.experimental import pallas as pl
from jax.experimental.pallas import tpu as pltpu

EPS = 1e-5        # BatchNorm2d default eps
CLIP_MAX = 20.0   # ReLU here is Hardtanh(0, 20)


def _round_up(x, m):
    return ((x + m - 1) // m) * m


# ----------------------------------------------------------------------------
# Constant border masks for the 9 taps of a 3x3 / pad=1 conv over flattened
# pixels p = n*(H*W) + y*W + x.  Tap order: dy in (-1,0,1) outer, dx inner.
# ----------------------------------------------------------------------------
def _make_tap_masks(N, H, W):
    P = N * H * W
    p = jnp.arange(P, dtype=jnp.int32)
    yy = (p % (H * W)) // W
    xx = p % W
    rows = []
    for dy in (-1, 0, 1):
        for dx in (-1, 0, 1):
            ok = (yy + dy >= 0) & (yy + dy < H) & (xx + dx >= 0) & (xx + dx < W)
            rows.append(ok.astype(jnp.float32))
    return jnp.stack(rows, axis=0)          # (9, P)


# ----------------------------------------------------------------------------
# One-time parameter / constant packing (hygiene: NOT in the per-call wrapper)
# ----------------------------------------------------------------------------
def prepare_block_inputs(params, N, H, W):
    nums = len(params["conv_w"])
    Cw = params["conv_w"][0].shape[3]
    K9 = 9 * Cw
    R9 = _round_up(K9, 8)                                    # sublane-aligned K
    # HWIO (3,3,Cin,Cout) -> (Cout, 9*Cin), column order (ky, kx, ci), then
    # zero-pad K up to R9 so the MXU operand is sublane-aligned.
    w_packed = jnp.stack(
        [jnp.transpose(w, (3, 0, 1, 2)).reshape(Cw, K9)
         for w in params["conv_w"]], axis=0)                 # (nums, Cw, 9Cw)
    w_packed = jnp.pad(w_packed, ((0, 0), (0, 0), (0, R9 - K9)))
    g = jnp.stack(params["bn_gamma"], axis=0).reshape(nums, Cw, 1)
    b = jnp.stack(params["bn_beta"], axis=0).reshape(nums, Cw, 1)
    # Pre-broadcast per-channel mask block: row r = tap (r // Cw).  K-padding
    # rows are zero.  Applied as ONE full-block multiply per conv.
    masks9 = _make_tap_masks(N, H, W)                        # (9, P)
    mask_block = jnp.repeat(masks9, Cw, axis=0)              # (9*Cw, P)
    mask_block = jnp.pad(mask_block, ((0, R9 - K9), (0, 0)))  # (R9, P)
    return {"w_packed": w_packed, "gamma": g, "beta": b,
            "mask_block": mask_block}


# ----------------------------------------------------------------------------
# Fused kernel factory (shapes are compile-time constants via closure)
# ----------------------------------------------------------------------------
def _make_block_kernel(N, H, W, C, Cw, nums, R9):
    P = N * H * W
    inv_P = 1.0 / P
    # roll amount so that roll(sp, amt)[:, p] == sp[:, (p + dy*W + dx) mod P]
    shift_amts = [(-(dy * W + dx)) % P for dy in (-1, 0, 1) for dx in (-1, 0, 1)]

    def kernel(x_ref, w_ref, g_ref, b_ref, mask_ref, o_ref, im_ref):
        # x_ref   : (C, P)          input, channels on sublanes / pixels on lanes
        # w_ref   : (nums, Cw, R9)  im2col-packed conv weights (zero-padded K)
        # g_ref   : (nums, Cw, 1)   BN gamma
        # b_ref   : (nums, Cw, 1)   BN beta
        # mask_ref: (R9, P)         per-row border masks (K-padding rows zero)
        # o_ref   : (C, P)
        # im_ref  : (R9, P) f32     sublane-aligned im2col staging scratch

        # Zero the K-padding rows of the staging buffer once; taps only ever
        # write rows [0, 9*Cw).
        if R9 > 9 * Cw:
            im_ref[pl.ds(9 * Cw, R9 - 9 * Cw), :] = jnp.zeros(
                (R9 - 9 * Cw, P), jnp.float32)

        # Hoisted: masks loaded once and reused by all three convs.
        maskblk = mask_ref[...].astype(jnp.float32)          # (R9, P)

        # Channel split: zero-cost sublane-slice reads of the resident input.
        spx = [x_ref[pl.ds(i * Cw, Cw), :].astype(jnp.float32)
               for i in range(C // Cw)]

        def batch_stats(y):
            # Single-pass stats: one stacked [y; y*y] cross-lane reduction.
            sums = jnp.sum(jnp.concatenate([y, y * y], axis=0),
                           axis=1, keepdims=True)            # (2*Cw, 1)
            m = sums[:Cw] * inv_P
            v = sums[Cw:] * inv_P - m * m                    # biased variance
            return m, v

        def conv_bn_relu(sp, i):
            # Scatter the 9 taps into the aligned staging buffer; the center
            # tap (dy=dx=0) is an identity shift -> no roll, no mask needed
            # beyond the (all-ones) row of the bulk mask multiply.
            for k, amt in enumerate(shift_amts):
                if amt == 0:
                    im_ref[pl.ds(k * Cw, Cw), :] = sp
                else:
                    im_ref[pl.ds(k * Cw, Cw), :] = pltpu.roll(sp, amt, axis=1)
            patches = im_ref[...] * maskblk                  # (R9, P)
            y = jnp.dot(w_ref[i].astype(jnp.float32), patches,
                        preferred_element_type=jnp.float32)  # (Cw, P)
            # BN folded to one per-channel affine + Hardtanh(0, 20).
            m, v = batch_stats(y)
            scale = g_ref[i].astype(jnp.float32) * jax.lax.rsqrt(v + EPS)
            shift = b_ref[i].astype(jnp.float32) - m * scale
            return jnp.clip(y * scale + shift, 0.0, CLIP_MAX)

        # ---- first loop: chained conv -> BN(batch stats) -> Hardtanh --------
        sp = spx[0]
        y = None
        for i in range(nums):
            if i > 0:
                sp = y + spx[i]
            y = conv_bn_relu(sp, i)
        # y == sp at loop exit in the PyTorch code (y_last)

        # ---- second loop: each branch is relu(bns[i](y_last)) ---------------
        # (outconvs[i](sp) and the outsp + outspx[i] adds are dead in the
        #  PyTorch code — overwritten before use — so they are not computed.
        #  All three BNs see the same tensor -> compute its stats ONCE.)
        m, v = batch_stats(y)
        inv_std = jax.lax.rsqrt(v + EPS)
        for i in range(nums):
            scale = g_ref[i].astype(jnp.float32) * inv_std
            shift = b_ref[i].astype(jnp.float32) - m * scale
            z = jnp.clip(y * scale + shift, 0.0, CLIP_MAX)   # branch output
            # residual add + final Hardtanh, written straight to the output
            # sublane slice (no concat / relayout of the full tensor).
            o_ref[pl.ds(i * Cw, Cw), :] = jnp.clip(
                z + spx[i], 0.0, CLIP_MAX).astype(o_ref.dtype)
        # untouched last split + residual (its own slice of x) + Hardtanh
        o_ref[pl.ds(nums * Cw, Cw), :] = jnp.clip(
            2.0 * spx[nums], 0.0, CLIP_MAX).astype(o_ref.dtype)

    return kernel


# ----------------------------------------------------------------------------
# Full block forward (matches BasicBlockRes2Net34_double.forward)
# ----------------------------------------------------------------------------
def basic_block_res2net34_double_forward(x_nchw, packed):
    """x_nchw: (N, inplanes, H, W) float32, inplanes == planes, scale == 4.
    `packed` comes from prepare_block_inputs (ready-to-use kernel operands)."""
    N, C, H, W = x_nchw.shape
    P = N * H * W
    nums, Cw, R9 = packed["w_packed"].shape
    assert C == 4 * Cw and nums == 3, "kernel specialized for scale == 4"

    # Boundary layout adaptation: NCHW -> (C, N*H*W) (one transpose each way).
    # TODO(synk): at production feature-map sizes fold this transpose into the
    # kernel's own DMA (grid over batch / pixel tiles) instead of a separate
    # XLA op; at this shape it is a single tiny fusion.
    x_cp = jnp.transpose(x_nchw, (1, 0, 2, 3)).reshape(C, P)

    kernel = _make_block_kernel(N, H, W, C, Cw, nums, R9)
    out_cp = pl.pallas_call(
        kernel,
        out_shape=jax.ShapeDtypeStruct((C, P), x_nchw.dtype),
        grid=(1,),
        in_specs=[
            pl.BlockSpec((C, P), lambda i: (0, 0)),
            pl.BlockSpec((nums, Cw, R9), lambda i: (0, 0, 0)),
            pl.BlockSpec((nums, Cw, 1), lambda i: (0, 0, 0)),
            pl.BlockSpec((nums, Cw, 1), lambda i: (0, 0, 0)),
            pl.BlockSpec((R9, P), lambda i: (0, 0)),
        ],
        out_specs=pl.BlockSpec((C, P), lambda i: (0, 0)),
        scratch_shapes=[pltpu.VMEM((R9, P), jnp.float32)],
        compiler_params=pltpu.CompilerParams(
            dimension_semantics=("arbitrary",)),
    )(x_cp, packed["w_packed"], packed["gamma"], packed["beta"],
      packed["mask_block"])

    return jnp.transpose(out_cp.reshape(C, N, H, W), (1, 0, 2, 3))  # to NCHW


# ----------------------------------------------------------------------------
# Deterministic parameter init (synthetic; shapes per module __init__)
# ----------------------------------------------------------------------------
def init_params(key, inplanes, planes, scale=4):
    inwidth = int(math.floor(inplanes / 4))
    outwidth = int(math.floor(planes / 4))
    nums = 1 if scale == 1 else scale - 1
    keys = jax.random.split(key, 3 * nums)
    conv_w, gammas, betas = [], [], []
    for i in range(nums):
        kw, kg, kb = keys[3 * i], keys[3 * i + 1], keys[3 * i + 2]
        # conv3x3(inwidth, outwidth), no bias; stored HWIO.
        conv_w.append(0.2 * jax.random.normal(kw, (3, 3, inwidth, outwidth),
                                              jnp.float32))
        gammas.append(1.0 + 0.1 * jax.random.normal(kg, (outwidth,), jnp.float32))
        betas.append(0.1 * jax.random.normal(kb, (outwidth,), jnp.float32))
    return {"conv_w": conv_w, "bn_gamma": gammas, "bn_beta": betas}


# ----------------------------------------------------------------------------
# Pure-JAX reference (same math, via lax.conv) for a correctness check
# ----------------------------------------------------------------------------
def _ref_conv_bn_relu(x, w, g, b):
    y = jax.lax.conv_general_dilated(
        x, w, window_strides=(1, 1), padding="SAME",
        dimension_numbers=("NHWC", "HWIO", "NHWC"))
    m = jnp.mean(y, axis=(0, 1, 2), keepdims=True)
    v = jnp.mean((y - m) ** 2, axis=(0, 1, 2), keepdims=True)
    return jnp.clip((y - m) * jax.lax.rsqrt(v + EPS) * g + b, 0.0, CLIP_MAX)


def _ref_bn_relu(x, g, b):
    m = jnp.mean(x, axis=(0, 1, 2), keepdims=True)
    v = jnp.mean((x - m) ** 2, axis=(0, 1, 2), keepdims=True)
    return jnp.clip((x - m) * jax.lax.rsqrt(v + EPS) * g + b, 0.0, CLIP_MAX)


def _ref_forward(x_nchw, params, scale=4):
    N, C, H, W = x_nchw.shape
    inwidth = C // 4
    nums = scale - 1
    x = jnp.transpose(x_nchw, (0, 2, 3, 1))
    spx = [x[..., i * inwidth:(i + 1) * inwidth] for i in range(scale)]
    sp = spx[0]
    y = None
    for i in range(nums):
        if i > 0:
            sp = y + spx[i]
        y = _ref_conv_bn_relu(sp, params["conv_w"][i],
                              params["bn_gamma"][i], params["bn_beta"][i])
    zs = [_ref_bn_relu(y, params["bn_gamma"][i], params["bn_beta"][i])
          for i in range(nums)]
    out = jnp.concatenate(zs + [spx[nums]], axis=-1)
    out = jnp.clip(out + x, 0.0, CLIP_MAX)
    return jnp.transpose(out, (0, 3, 1, 2))


# ----------------------------------------------------------------------------
if __name__ == "__main__":
    # inplanes == planes == 16 so the in-loop `sp + spx[i]` add is shape-valid
    # (inwidth == outwidth == 4); N*H*W = 512 lanes -> fills the 256-wide MXU
    # N dimension twice over while staying far under any VMEM limit.
    N, inplanes, H, W = 2, 16, 16, 16
    planes, scale = 16, 4

    key = jax.random.PRNGKey(0)
    k_x, k_p = jax.random.split(key)
    x = jax.random.normal(k_x, (N, inplanes, H, W), jnp.float32)
    params = init_params(k_p, inplanes, planes, scale)
    packed = prepare_block_inputs(params, N, H, W)   # one-time packing

    fwd = jax.jit(basic_block_res2net34_double_forward)
    out = jax.block_until_ready(fwd(x, packed))

    assert out.shape == (N, planes, H, W), out.shape
    ref = jax.block_until_ready(_ref_forward(x, params, scale))
    max_err = float(jnp.max(jnp.abs(out - ref)))
    assert jnp.allclose(out, ref, atol=1e-3, rtol=1e-3), max_err

    print("KERNEL_OK")
</pallas_src>

<mosaic_0001>
module attributes {stable_mosaic.version = 11 : i64} {
  func.func @kernel(%arg0: i32, %arg1: memref<16x512xf32, #tpu.memory_space<vmem>>, %arg2: memref<3x4x40xf32, #tpu.memory_space<vmem>>, %arg3: memref<3x4x1xf32, #tpu.memory_space<vmem>>, %arg4: memref<3x4x1xf32, #tpu.memory_space<vmem>>, %arg5: memref<40x512xf32, #tpu.memory_space<vmem>>, %arg6: memref<16x512xf32, #tpu.memory_space<vmem>>, %arg7: memref<40x512xf32, #tpu.memory_space<vmem>>) attributes {dimension_semantics = [#tpu.dimension_semantics<arbitrary>], iteration_bounds = array<i64: 1>, scalar_prefetch = 0 : i64, scratch_operands = 1 : i64, tpu.core_type = #tpu.core_type<tc>, window_params = [{pipeline_mode = #tpu.pipeline_mode<synchronous>, transform_indices = @transform_0, window_bounds = array<i64: 16, 512>}, {pipeline_mode = #tpu.pipeline_mode<synchronous>, transform_indices = @transform_1, window_bounds = array<i64: 3, 4, 40>}, {pipeline_mode = #tpu.pipeline_mode<synchronous>, transform_indices = @transform_2, window_bounds = array<i64: 3, 4, 1>}, {pipeline_mode = #tpu.pipeline_mode<synchronous>, transform_indices = @transform_3, window_bounds = array<i64: 3, 4, 1>}, {pipeline_mode = #tpu.pipeline_mode<synchronous>, transform_indices = @transform_4, window_bounds = array<i64: 40, 512>}, {pipeline_mode = #tpu.pipeline_mode<synchronous>, transform_indices = @transform_5, window_bounds = array<i64: 16, 512>}]} {
    %cst = arith.constant 0.000000e+00 : f32
    %0 = vector.broadcast %cst : f32 to vector<4x512xf32>
    %c36 = arith.constant 36 : index
    %c0 = arith.constant 0 : index
    %1 = vector.load %arg7[%c36, %c0] : memref<40x512xf32, #tpu.memory_space<vmem>>, vector<4x512xf32>
    tpu.vector_store %arg7[%c36, %c0], %0 {strides = array<i32>} : memref<40x512xf32, #tpu.memory_space<vmem>>, vector<4x512xf32>,
    %c0_0 = arith.constant 0 : index
    %c0_1 = arith.constant 0 : index
    %2 = vector.load %arg5[%c0_0, %c0_1] : memref<40x512xf32, #tpu.memory_space<vmem>>, vector<40x512xf32>
    %c0_2 = arith.constant 0 : index
    %c0_3 = arith.constant 0 : index
    %3 = vector.load %arg1[%c0_2, %c0_3] : memref<16x512xf32, #tpu.memory_space<vmem>>, vector<4x512xf32>
    %c4 = arith.constant 4 : index
    %c0_4 = arith.constant 0 : index
    %4 = vector.load %arg1[%c4, %c0_4] : memref<16x512xf32, #tpu.memory_space<vmem>>, vector<4x512xf32>
    %c8 = arith.constant 8 : index
    %c0_5 = arith.constant 0 : index
    %5 = vector.load %arg1[%c8, %c0_5] : memref<16x512xf32, #tpu.memory_space<vmem>>, vector<4x512xf32>
    %c12 = arith.constant 12 : index
    %c0_6 = arith.constant 0 : index
    %6 = vector.load %arg1[%c12, %c0_6] : memref<16x512xf32, #tpu.memory_space<vmem>>, vector<4x512xf32>
    %c17_i32 = arith.constant 17 : i32
    %7 = tpu.dynamic_rotate %3 by %c17_i32 dim 1 : vector<4x512xf32>, i32 -> vector<4x512xf32>
    %c0_7 = arith.constant 0 : index
    %c0_8 = arith.constant 0 : index
    %8 = vector.load %arg7[%c0_7, %c0_8] : memref<40x512xf32, #tpu.memory_space<vmem>>, vector<4x512xf32>
    tpu.vector_store %arg7[%c0_7, %c0_8], %7 {strides = array<i32>} : memref<40x512xf32, #tpu.memory_space<vmem>>, vector<4x512xf32>,
    %c16_i32 = arith.constant 16 : i32
    %9 = tpu.dynamic_rotate %3 by %c16_i32 dim 1 : vector<4x512xf32>, i32 -> vector<4x512xf32>
    %c4_9 = arith.constant 4 : index
    %c0_10 = arith.constant 0 : index
    %10 = vector.load %arg7[%c4_9, %c0_10] : memref<40x512xf32, #tpu.memory_space<vmem>>, vector<4x512xf32>
    tpu.vector_store %arg7[%c4_9, %c0_10], %9 {strides = array<i32>} : memref<40x512xf32, #tpu.memory_space<vmem>>, vector<4x512xf32>,
    %c15_i32 = arith.constant 15 : i32
    %11 = tpu.dynamic_rotate %3 by %c15_i32 dim 1 : vector<4x512xf32>, i32 -> vector<4x512xf32>
    %c8_11 = arith.constant 8 : index
    %c0_12 = arith.constant 0 : index
    %12 = vector.load %arg7[%c8_11, %c0_12] : memref<40x512xf32, #tpu.memory_space<vmem>>, vector<4x512xf32>
    tpu.vector_store %arg7[%c8_11, %c0_12], %11 {strides = array<i32>} : memref<40x512xf32, #tpu.memory_space<vmem>>, vector<4x512xf32>,
    %c1_i32 = arith.constant 1 : i32
    %13 = tpu.dynamic_rotate %3 by %c1_i32 dim 1 : vector<4x512xf32>, i32 -> vector<4x512xf32>
    %c12_13 = arith.constant 12 : index
    %c0_14 = arith.constant 0 : index
    %14 = vector.load %arg7[%c12_13, %c0_14] : memref<40x512xf32, #tpu.memory_space<vmem>>, vector<4x512xf32>
    tpu.vector_store %arg7[%c12_13, %c0_14], %13 {strides = array<i32>} : memref<40x512xf32, #tpu.memory_space<vmem>>, vector<4x512xf32>,
    %c16 = arith.constant 16 : index
    %c0_15 = arith.constant 0 : index
    %15 = vector.load %arg7[%c16, %c0_15] : memref<40x512xf32, #tpu.memory_space<vmem>>, vector<4x512xf32>
    tpu.vector_store %arg7[%c16, %c0_15], %3 {strides = array<i32>} : memref<40x512xf32, #tpu.memory_space<vmem>>, vector<4x512xf32>,
    %c511_i32 = arith.constant 511 : i32
    %16 = tpu.dynamic_rotate %3 by %c511_i32 dim 1 : vector<4x512xf32>, i32 -> vector<4x512xf32>
    %c20 = arith.constant 20 : index
    %c0_16 = arith.constant 0 : index
    %17 = vector.load %arg7[%c20, %c0_16] : memref<40x512xf32, #tpu.memory_space<vmem>>, vector<4x512xf32>
    tpu.vector_store %arg7[%c20, %c0_16], %16 {strides = array<i32>} : memref<40x512xf32, #tpu.memory_space<vmem>>, vector<4x512xf32>,
    %c497_i32 = arith.constant 497 : i32
    %18 = tpu.dynamic_rotate %3 by %c497_i32 dim 1 : vector<4x512xf32>, i32 -> vector<4x512xf32>
    %c24 = arith.constant 24 : index
    %c0_17 = arith.constant 0 : index
    %19 = vector.load %arg7[%c24, %c0_17] : memref<40x512xf32, #tpu.memory_space<vmem>>, vector<4x512xf32>
    tpu.vector_store %arg7[%c24, %c0_17], %18 {strides = array<i32>} : memref<40x512xf32, #tpu.memory_space<vmem>>, vector<4x512xf32>,
    %c496_i32 = arith.constant 496 : i32
    %20 = tpu.dynamic_rotate %3 by %c496_i32 dim 1 : vector<4x512xf32>, i32 -> vector<4x512xf32>
    %c28 = arith.constant 28 : index
    %c0_18 = arith.constant 0 : index
    %21 = vector.load %arg7[%c28, %c0_18] : memref<40x512xf32, #tpu.memory_space<vmem>>, vector<4x512xf32>
    tpu.vector_store %arg7[%c28, %c0_18], %20 {strides = array<i32>} : memref<40x512xf32, #tpu.memory_space<vmem>>, vector<4x512xf32>,
    %c495_i32 = arith.constant 495 : i32
    %22 = tpu.dynamic_rotate %3 by %c495_i32 dim 1 : vector<4x512xf32>, i32 -> vector<4x512xf32>
    %c32 = arith.constant 32 : index
    %c0_19 = arith.constant 0 : index
    %23 = vector.load %arg7[%c32, %c0_19] : memref<40x512xf32, #tpu.memory_space<vmem>>, vector<4x512xf32>
    tpu.vector_store %arg7[%c32, %c0_19], %22 {strides = array<i32>} : memref<40x512xf32, #tpu.memory_space<vmem>>, vector<4x512xf32>,
    %c0_20 = arith.constant 0 : index
    %c0_21 = arith.constant 0 : index
    %24 = vector.load %arg7[%c0_20, %c0_21] : memref<40x512xf32, #tpu.memory_space<vmem>>, vector<40x512xf32>
    %25 = arith.mulf %24, %2 : vector<40x512xf32>
    %c0_22 = arith.constant 0 : index
    %c0_23 = arith.constant 0 : index
    %c0_24 = arith.constant 0 : index
    %26 = vector.load %arg2[%c0_22, %c0_23, %c0_24] : memref<3x4x40xf32, #tpu.memory_space<vmem>>, vector<1x4x40xf32>
    %27 = vector.shape_cast %26 : vector<1x4x40xf32> to vector<4x40xf32>
    %cst_25 = arith.constant dense<0.000000e+00> : vector<4x512xf32>
    %28 = tpu.matmul %27, %25, %cst_25 {dimension_numbers = #tpu.dot_dimension_numbers<[1], [0], [0], [1], [0, 0, 1, 1], [], []>} : vector<4x40xf32>, vector<40x512xf32>, vector<4x512xf32> -> vector<4x512xf32>
    %29 = arith.mulf %28, %28 : vector<4x512xf32>
    %30 = tpu.concatenate %28, %29 in 0 : vector<4x512xf32>, vector<4x512xf32> -> vector<8x512xf32>
    %cst_26 = arith.constant dense<0.000000e+00> : vector<8xf32>
    %31 = vector.multi_reduction <add>, %30, %cst_26 [1] : vector<8x512xf32> to vector<8xf32>
    %32 = vector.shape_cast %31 : vector<8xf32> to vector<8x1xf32>
    %33 = vector.extract_strided_slice %32 {offsets = [0, 0], sizes = [4, 1], strides = [1, 1]} : vector<8x1xf32> to vector<4x1xf32>
    %cst_27 = arith.constant 0.001953125 : f32
    %34 = vector.broadcast %cst_27 : f32 to vector<4x1xf32>
    %35 = arith.mulf %33, %34 : vector<4x1xf32>
    %36 = vector.extract_strided_slice %32 {offsets = [4, 0], sizes = [4, 1], strides = [1, 1]} : vector<8x1xf32> to vector<4x1xf32>
    %cst_28 = arith.constant 0.001953125 : f32
    %37 = vector.broadcast %cst_28 : f32 to vector<4x1xf32>
    %38 = arith.mulf %36, %37 : vector<4x1xf32>
    %39 = arith.mulf %35, %35 : vector<4x1xf32>
    %40 = arith.subf %38, %39 : vector<4x1xf32>
    %c0_29 = arith.constant 0 : index
    %c0_30 = arith.constant 0 : index
    %c0_31 = arith.constant 0 : index
    %41 = vector.load %arg3[%c0_29, %c0_30, %c0_31] : memref<3x4x1xf32, #tpu.memory_space<vmem>>, vector<1x4x1xf32>
    %42 = vector.shape_cast %41 : vector<1x4x1xf32> to vector<4x1xf32>
    %cst_32 = arith.constant 9.99999974E-6 : f32
    %43 = vector.broadcast %cst_32 : f32 to vector<4x1xf32>
    %44 = arith.addf %40, %43 : vector<4x1xf32>
    %45 = math.rsqrt %44 : vector<4x1xf32>
    %46 = arith.mulf %42, %45 : vector<4x1xf32>
    %c0_33 = arith.constant 0 : index
    %c0_34 = arith.constant 0 : index
    %c0_35 = arith.constant 0 : index
    %47 = vector.load %arg4[%c0_33, %c0_34, %c0_35] : memref<3x4x1xf32, #tpu.memory_space<vmem>>, vector<1x4x1xf32>
    %48 = vector.shape_cast %47 : vector<1x4x1xf32> to vector<4x1xf32>
    %49 = arith.mulf %35, %46 : vector<4x1xf32>
    %50 = arith.subf %48, %49 : vector<4x1xf32>
    %51 = vector.broadcast %46 : vector<4x1xf32> to vector<4x512xf32>
    %52 = arith.mulf %28, %51 : vector<4x512xf32>
    %53 = vector.broadcast %50 : vector<4x1xf32> to vector<4x512xf32>
    %54 = arith.addf %52, %53 : vector<4x512xf32>
    %cst_36 = arith.constant 0.000000e+00 : f32
    %cst_37 = arith.constant 2.000000e+01 : f32
    %55 = vector.broadcast %cst_36 : f32 to vector<4x512xf32>
    %56 = arith.maximumf %55, %54 : vector<4x512xf32>
    %57 = vector.broadcast %cst_37 : f32 to vector<4x512xf32>
    %58 = arith.minimumf %57, %56 : vector<4x512xf32>
    %59 = arith.addf %58, %4 : vector<4x512xf32>
    %c17_i32_38 = arith.constant 17 : i32
    %60 = tpu.dynamic_rotate %59 by %c17_i32_38 dim 1 : vector<4x512xf32>, i32 -> vector<4x512xf32>
    %c0_39 = arith.constant 0 : index
    %c0_40 = arith.constant 0 : index
    %61 = vector.load %arg7[%c0_39, %c0_40] : memref<40x512xf32, #tpu.memory_space<vmem>>, vector<4x512xf32>
    tpu.vector_store %arg7[%c0_39, %c0_40], %60 {strides = array<i32>} : memref<40x512xf32, #tpu.memory_space<vmem>>, vector<4x512xf32>,
    %c16_i32_41 = arith.constant 16 : i32
    %62 = tpu.dynamic_rotate %59 by %c16_i32_41 dim 1 : vector<4x512xf32>, i32 -> vector<4x512xf32>
    %c4_42 = arith.constant 4 : index
    %c0_43 = arith.constant 0 : index
    %63 = vector.load %arg7[%c4_42, %c0_43] : memref<40x512xf32, #tpu.memory_space<vmem>>, vector<4x512xf32>
    tpu.vector_store %arg7[%c4_42, %c0_43], %62 {strides = array<i32>} : memref<40x512xf32, #tpu.memory_space<vmem>>, vector<4x512xf32>,
    %c15_i32_44 = arith.constant 15 : i32
    %64 = tpu.dynamic_rotate %59 by %c15_i32_44 dim 1 : vector<4x512xf32>, i32 -> vector<4x512xf32>
    %c8_45 = arith.constant 8 : index
    %c0_46 = arith.constant 0 : index
    %65 = vector.load %arg7[%c8_45, %c0_46] : memref<40x512xf32, #tpu.memory_space<vmem>>, vector<4x512xf32>
    tpu.vector_store %arg7[%c8_45, %c0_46], %64 {strides = array<i32>} : memref<40x512xf32, #tpu.memory_space<vmem>>, vector<4x512xf32>,
    %c1_i32_47 = arith.constant 1 : i32
    %66 = tpu.dynamic_rotate %59 by %c1_i32_47 dim 1 : vector<4x512xf32>, i32 -> vector<4x512xf32>
    %c12_48 = arith.constant 12 : index
    %c0_49 = arith.constant 0 : index
    %67 = vector.load %arg7[%c12_48, %c0_49] : memref<40x512xf32, #tpu.memory_space<vmem>>, vector<4x512xf32>
    tpu.vector_store %arg7[%c12_48, %c0_49], %66 {strides = array<i32>} : memref<40x512xf32, #tpu.memory_space<vmem>>, vector<4x512xf32>,
    %c16_50 = arith.constant 16 : index
    %c0_51 = arith.constant 0 : index
    %68 = vector.load %arg7[%c16_50, %c0_51] : memref<40x512xf32, #tpu.memory_space<vmem>>, vector<4x512xf32>
    tpu.vector_store %arg7[%c16_50, %c0_51], %59 {strides = array<i32>} : memref<40x512xf32, #tpu.memory_space<vmem>>, vector<4x512xf32>,
    %c511_i32_52 = arith.constant 511 : i32
    %69 = tpu.dynamic_rotate %59 by %c511_i32_52 dim 1 : vector<4x512xf32>, i32 -> vector<4x512xf32>
    %c20_53 = arith.constant 20 : index
    %c0_54 = arith.constant 0 : index
    %70 = vector.load %arg7[%c20_53, %c0_54] : memref<40x512xf32, #tpu.memory_space<vmem>>, vector<4x512xf32>
    tpu.vector_store %arg7[%c20_53, %c0_54], %69 {strides = array<i32>} : memref<40x512xf32, #tpu.memory_space<vmem>>, vector<4x512xf32>,
    %c497_i32_55 = arith.constant 497 : i32
    %71 = tpu.dynamic_rotate %59 by %c497_i32_55 dim 1 : vector<4x512xf32>, i32 -> vector<4x512xf32>
    %c24_56 = arith.constant 24 : index
    %c0_57 = arith.constant 0 : index
    %72 = vector.load %arg7[%c24_56, %c0_57] : memref<40x512xf32, #tpu.memory_space<vmem>>, vector<4x512xf32>
    tpu.vector_store %arg7[%c24_56, %c0_57], %71 {strides = array<i32>} : memref<40x512xf32, #tpu.memory_space<vmem>>, vector<4x512xf32>,
    %c496_i32_58 = arith.constant 496 : i32
    %73 = tpu.dynamic_rotate %59 by %c496_i32_58 dim 1 : vector<4x512xf32>, i32 -> vector<4x512xf32>
    %c28_59 = arith.constant 28 : index
    %c0_60 = arith.constant 0 : index
    %74 = vector.load %arg7[%c28_59, %c0_60] : memref<40x512xf32, #tpu.memory_space<vmem>>, vector<4x512xf32>
    tpu.vector_store %arg7[%c28_59, %c0_60], %73 {strides = array<i32>} : memref<40x512xf32, #tpu.memory_space<vmem>>, vector<4x512xf32>,
    %c495_i32_61 = arith.constant 495 : i32
    %75 = tpu.dynamic_rotate %59 by %c495_i32_61 dim 1 : vector<4x512xf32>, i32 -> vector<4x512xf32>
    %c32_62 = arith.constant 32 : index
    %c0_63 = arith.constant 0 : index
    %76 = vector.load %arg7[%c32_62, %c0_63] : memref<40x512xf32, #tpu.memory_space<vmem>>, vector<4x512xf32>
    tpu.vector_store %arg7[%c32_62, %c0_63], %75 {strides = array<i32>} : memref<40x512xf32, #tpu.memory_space<vmem>>, vector<4x512xf32>,
    %c0_64 = arith.constant 0 : index
    %c0_65 = arith.constant 0 : index
    %77 = vector.load %arg7[%c0_64, %c0_65] : memref<40x512xf32, #tpu.memory_space<vmem>>, vector<40x512xf32>
    %78 = arith.mulf %77, %2 : vector<40x512xf32>
    %c1 = arith.constant 1 : index
    %c0_66 = arith.constant 0 : index
    %c0_67 = arith.constant 0 : index
    %79 = vector.load %arg2[%c1, %c0_66, %c0_67] : memref<3x4x40xf32, #tpu.memory_space<vmem>>, vector<1x4x40xf32>
    %80 = vector.shape_cast %79 : vector<1x4x40xf32> to vector<4x40xf32>
    %cst_68 = arith.constant dense<0.000000e+00> : vector<4x512xf32>
    %81 = tpu.matmul %80, %78, %cst_68 {dimension_numbers = #tpu.dot_dimension_numbers<[1], [0], [0], [1], [0, 0, 1, 1], [], []>} : vector<4x40xf32>, vector<40x512xf32>, vector<4x512xf32> -> vector<4x512xf32>
    %82 = arith.mulf %81, %81 : vector<4x512xf32>
    %83 = tpu.concatenate %81, %82 in 0 : vector<4x512xf32>, vector<4x512xf32> -> vector<8x512xf32>
    %cst_69 = arith.constant dense<0.000000e+00> : vector<8xf32>
    %84 = vector.multi_reduction <add>, %83, %cst_69 [1] : vector<8x512xf32> to vector<8xf32>
    %85 = vector.shape_cast %84 : vector<8xf32> to vector<8x1xf32>
    %86 = vector.extract_strided_slice %85 {offsets = [0, 0], sizes = [4, 1], strides = [1, 1]} : vector<8x1xf32> to vector<4x1xf32>
    %cst_70 = arith.constant 0.001953125 : f32
    %87 = vector.broadcast %cst_70 : f32 to vector<4x1xf32>
    %88 = arith.mulf %86, %87 : vector<4x1xf32>
    %89 = vector.extract_strided_slice %85 {offsets = [4, 0], sizes = [4, 1], strides = [1, 1]} : vector<8x1xf32> to vector<4x1xf32>
    %cst_71 = arith.constant 0.001953125 : f32
    %90 = vector.broadcast %cst_71 : f32 to vector<4x1xf32>
    %91 = arith.mulf %89, %90 : vector<4x1xf32>
    %92 = arith.mulf %88, %88 : vector<4x1xf32>
    %93 = arith.subf %91, %92 : vector<4x1xf32>
    %c1_72 = arith.constant 1 : index
    %c0_73 = arith.constant 0 : index
    %c0_74 = arith.constant 0 : index
    %94 = vector.load %arg3[%c1_72, %c0_73, %c0_74] : memref<3x4x1xf32, #tpu.memory_space<vmem>>, vector<1x4x1xf32>
    %95 = vector.shape_cast %94 : vector<1x4x1xf32> to vector<4x1xf32>
    %cst_75 = arith.constant 9.99999974E-6 : f32
    %96 = vector.broadcast %cst_75 : f32 to vector<4x1xf32>
    %97 = arith.addf %93, %96 : vector<4x1xf32>
    %98 = math.rsqrt %97 : vector<4x1xf32>
    %99 = arith.mulf %95, %98 : vector<4x1xf32>
    %c1_76 = arith.constant 1 : index
    %c0_77 = arith.constant 0 : index
    %c0_78 = arith.constant 0 : index
    %100 = vector.load %arg4[%c1_76, %c0_77, %c0_78] : memref<3x4x1xf32, #tpu.memory_space<vmem>>, vector<1x4x1xf32>
    %101 = vector.shape_cast %100 : vector<1x4x1xf32> to vector<4x1xf32>
    %102 = arith.mulf %88, %99 : vector<4x1xf32>
    %103 = arith.subf %101, %102 : vector<4x1xf32>
    %104 = vector.broadcast %99 : vector<4x1xf32> to vector<4x512xf32>
    %105 = arith.mulf %81, %104 : vector<4x512xf32>
    %106 = vector.broadcast %103 : vector<4x1xf32> to vector<4x512xf32>
    %107 = arith.addf %105, %106 : vector<4x512xf32>
    %cst_79 = arith.constant 0.000000e+00 : f32
    %cst_80 = arith.constant 2.000000e+01 : f32
    %108 = vector.broadcast %cst_79 : f32 to vector<4x512xf32>
    %109 = arith.maximumf %108, %107 : vector<4x512xf32>
    %110 = vector.broadcast %cst_80 : f32 to vector<4x512xf32>
    %111 = arith.minimumf %110, %109 : vector<4x512xf32>
    %112 = arith.addf %111, %5 : vector<4x512xf32>
    %c17_i32_81 = arith.constant 17 : i32
    %113 = tpu.dynamic_rotate %112 by %c17_i32_81 dim 1 : vector<4x512xf32>, i32 -> vector<4x512xf32>
    %c0_82 = arith.constant 0 : index
    %c0_83 = arith.constant 0 : index
    %114 = vector.load %arg7[%c0_82, %c0_83] : memref<40x512xf32, #tpu.memory_space<vmem>>, vector<4x512xf32>
    tpu.vector_store %arg7[%c0_82, %c0_83], %113 {strides = array<i32>} : memref<40x512xf32, #tpu.memory_space<vmem>>, vector<4x512xf32>,
    %c16_i32_84 = arith.constant 16 : i32
    %115 = tpu.dynamic_rotate %112 by %c16_i32_84 dim 1 : vector<4x512xf32>, i32 -> vector<4x512xf32>
    %c4_85 = arith.constant 4 : index
    %c0_86 = arith.constant 0 : index
    %116 = vector.load %arg7[%c4_85, %c0_86] : memref<40x512xf32, #tpu.memory_space<vmem>>, vector<4x512xf32>
    tpu.vector_store %arg7[%c4_85, %c0_86], %115 {strides = array<i32>} : memref<40x512xf32, #tpu.memory_space<vmem>>, vector<4x512xf32>,
    %c15_i32_87 = arith.constant 15 : i32
    %117 = tpu.dynamic_rotate %112 by %c15_i32_87 dim 1 : vector<4x512xf32>, i32 -> vector<4x512xf32>
    %c8_88 = arith.constant 8 : index
    %c0_89 = arith.constant 0 : index
    %118 = vector.load %arg7[%c8_88, %c0_89] : memref<40x512xf32, #tpu.memory_space<vmem>>, vector<4x512xf32>
    tpu.vector_store %arg7[%c8_88, %c0_89], %117 {strides = array<i32>} : memref<40x512xf32, #tpu.memory_space<vmem>>, vector<4x512xf32>,
    %c1_i32_90 = arith.constant 1 : i32
    %119 = tpu.dynamic_rotate %112 by %c1_i32_90 dim 1 : vector<4x512xf32>, i32 -> vector<4x512xf32>
    %c12_91 = arith.constant 12 : index
    %c0_92 = arith.constant 0 : index
    %120 = vector.load %arg7[%c12_91, %c0_92] : memref<40x512xf32, #tpu.memory_space<vmem>>, vector<4x512xf32>
    tpu.vector_store %arg7[%c12_91, %c0_92], %119 {strides = array<i32>} : memref<40x512xf32, #tpu.memory_space<vmem>>, vector<4x512xf32>,
    %c16_93 = arith.constant 16 : index
    %c0_94 = arith.constant 0 : index
    %121 = vector.load %arg7[%c16_93, %c0_94] : memref<40x512xf32, #tpu.memory_space<vmem>>, vector<4x512xf32>
    tpu.vector_store %arg7[%c16_93, %c0_94], %112 {strides = array<i32>} : memref<40x512xf32, #tpu.memory_space<vmem>>, vector<4x512xf32>,
    %c511_i32_95 = arith.constant 511 : i32
    %122 = tpu.dynamic_rotate %112 by %c511_i32_95 dim 1 : vector<4x512xf32>, i32 -> vector<4x512xf32>
    %c20_96 = arith.constant 20 : index
    %c0_97 = arith.constant 0 : index
    %123 = vector.load %arg7[%c20_96, %c0_97] : memref<40x512xf32, #tpu.memory_space<vmem>>, vector<4x512xf32>
    tpu.vector_store %arg7[%c20_96, %c0_97], %122 {strides = array<i32>} : memref<40x512xf32, #tpu.memory_space<vmem>>, vector<4x512xf32>,
    %c497_i32_98 = arith.constant 497 : i32
    %124 = tpu.dynamic_rotate %112 by %c497_i32_98 dim 1 : vector<4x512xf32>, i32 -> vector<4x512xf32>
    %c24_99 = arith.constant 24 : index
    %c0_100 = arith.constant 0 : index
    %125 = vector.load %arg7[%c24_99, %c0_100] : memref<40x512xf32, #tpu.memory_space<vmem>>, vector<4x512xf32>
    tpu.vector_store %arg7[%c24_99, %c0_100], %124 {strides = array<i32>} : memref<40x512xf32, #tpu.memory_space<vmem>>, vector<4x512xf32>,
    %c496_i32_101 = arith.constant 496 : i32
    %126 = tpu.dynamic_rotate %112 by %c496_i32_101 dim 1 : vector<4x512xf32>, i32 -> vector<4x512xf32>
    %c28_102 = arith.constant 28 : index
    %c0_103 = arith.constant 0 : index
    %127 = vector.load %arg7[%c28_102, %c0_103] : memref<40x512xf32, #tpu.memory_space<vmem>>, vector<4x512xf32>
    tpu.vector_store %arg7[%c28_102, %c0_103], %126 {strides = array<i32>} : memref<40x512xf32, #tpu.memory_space<vmem>>, vector<4x512xf32>,
    %c495_i32_104 = arith.constant 495 : i32
    %128 = tpu.dynamic_rotate %112 by %c495_i32_104 dim 1 : vector<4x512xf32>, i32 -> vector<4x512xf32>
    %c32_105 = arith.constant 32 : index
    %c0_106 = arith.constant 0 : index
    %129 = vector.load %arg7[%c32_105, %c0_106] : memref<40x512xf32, #tpu.memory_space<vmem>>, vector<4x512xf32>
    tpu.vector_store %arg7[%c32_105, %c0_106], %128 {strides = array<i32>} : memref<40x512xf32, #tpu.memory_space<vmem>>, vector<4x512xf32>,
    %c0_107 = arith.constant 0 : index
    %c0_108 = arith.constant 0 : index
    %130 = vector.load %arg7[%c0_107, %c0_108] : memref<40x512xf32, #tpu.memory_space<vmem>>, vector<40x512xf32>
    %131 = arith.mulf %130, %2 : vector<40x512xf32>
    %c2 = arith.constant 2 : index
    %c0_109 = arith.constant 0 : index
    %c0_110 = arith.constant 0 : index
    %132 = vector.load %arg2[%c2, %c0_109, %c0_110] : memref<3x4x40xf32, #tpu.memory_space<vmem>>, vector<1x4x40xf32>
    %133 = vector.shape_cast %132 : vector<1x4x40xf32> to vector<4x40xf32>
    %cst_111 = arith.constant dense<0.000000e+00> : vector<4x512xf32>
    %134 = tpu.matmul %133, %131, %cst_111 {dimension_numbers = #tpu.dot_dimension_numbers<[1], [0], [0], [1], [0, 0, 1, 1], [], []>} : vector<4x40xf32>, vector<40x512xf32>, vector<4x512xf32> -> vector<4x512xf32>
    %135 = arith.mulf %134, %134 : vector<4x512xf32>
    %136 = tpu.concatenate %134, %135 in 0 : vector<4x512xf32>, vector<4x512xf32> -> vector<8x512xf32>
    %cst_112 = arith.constant dense<0.000000e+00> : vector<8xf32>
    %137 = vector.multi_reduction <add>, %136, %cst_112 [1] : vector<8x512xf32> to vector<8xf32>
    %138 = vector.shape_cast %137 : vector<8xf32> to vector<8x1xf32>
    %139 = vector.extract_strided_slice %138 {offsets = [0, 0], sizes = [4, 1], strides = [1, 1]} : vector<8x1xf32> to vector<4x1xf32>
    %cst_113 = arith.constant 0.001953125 : f32
    %140 = vector.broadcast %cst_113 : f32 to vector<4x1xf32>
    %141 = arith.mulf %139, %140 : vector<4x1xf32>
    %142 = vector.extract_strided_slice %138 {offsets = [4, 0], sizes = [4, 1], strides = [1, 1]} : vector<8x1xf32> to vector<4x1xf32>
    %cst_114 = arith.constant 0.001953125 : f32
    %143 = vector.broadcast %cst_114 : f32 to vector<4x1xf32>
    %144 = arith.mulf %142, %143 : vector<4x1xf32>
    %145 = arith.mulf %141, %141 : vector<4x1xf32>
    %146 = arith.subf %144, %145 : vector<4x1xf32>
    %c2_115 = arith.constant 2 : index
    %c0_116 = arith.constant 0 : index
    %c0_117 = arith.constant 0 : index
    %147 = vector.load %arg3[%c2_115, %c0_116, %c0_117] : memref<3x4x1xf32, #tpu.memory_space<vmem>>, vector<1x4x1xf32>
    %148 = vector.shape_cast %147 : vector<1x4x1xf32> to vector<4x1xf32>
    %cst_118 = arith.constant 9.99999974E-6 : f32
    %149 = vector.broadcast %cst_118 : f32 to vector<4x1xf32>
    %150 = arith.addf %146, %149 : vector<4x1xf32>
    %151 = math.rsqrt %150 : vector<4x1xf32>
    %152 = arith.mulf %148, %151 : vector<4x1xf32>
    %c2_119 = arith.constant 2 : index
    %c0_120 = arith.constant 0 : index
    %c0_121 = arith.constant 0 : index
    %153 = vector.load %arg4[%c2_119, %c0_120, %c0_121] : memref<3x4x1xf32, #tpu.memory_space<vmem>>, vector<1x4x1xf32>
    %154 = vector.shape_cast %153 : vector<1x4x1xf32> to vector<4x1xf32>
    %155 = arith.mulf %141, %152 : vector<4x1xf32>
    %156 = arith.subf %154, %155 : vector<4x1xf32>
    %157 = vector.broadcast %152 : vector<4x1xf32> to vector<4x512xf32>
    %158 = arith.mulf %134, %157 : vector<4x512xf32>
    %159 = vector.broadcast %156 : vector<4x1xf32> to vector<4x512xf32>
    %160 = arith.addf %158, %159 : vector<4x512xf32>
    %cst_122 = arith.constant 0.000000e+00 : f32
    %cst_123 = arith.constant 2.000000e+01 : f32
    %161 = vector.broadcast %cst_122 : f32 to vector<4x512xf32>
    %162 = arith.maximumf %161, %160 : vector<4x512xf32>
    %163 = vector.broadcast %cst_123 : f32 to vector<4x512xf32>
    %164 = arith.minimumf %163, %162 : vector<4x512xf32>
    %165 = arith.mulf %164, %164 : vector<4x512xf32>
    %166 = tpu.concatenate %164, %165 in 0 : vector<4x512xf32>, vector<4x512xf32> -> vector<8x512xf32>
    %cst_124 = arith.constant dense<0.000000e+00> : vector<8xf32>
    %167 = vector.multi_reduction <add>, %166, %cst_124 [1] : vector<8x512xf32> to vector<8xf32>
    %168 = vector.shape_cast %167 : vector<8xf32> to vector<8x1xf32>
    %169 = vector.extract_strided_slice %168 {offsets = [0, 0], sizes = [4, 1], strides = [1, 1]} : vector<8x1xf32> to vector<4x1xf32>
    %cst_125 = arith.constant 0.001953125 : f32
    %170 = vector.broadcast %cst_125 : f32 to vector<4x1xf32>
    %171 = arith.mulf %169, %170 : vector<4x1xf32>
    %172 = vector.extract_strided_slice %168 {offsets = [4, 0], sizes = [4, 1], strides = [1, 1]} : vector<8x1xf32> to vector<4x1xf32>
    %cst_126 = arith.constant 0.001953125 : f32
    %173 = vector.broadcast %cst_126 : f32 to vector<4x1xf32>
    %174 = arith.mulf %172, %173 : vector<4x1xf32>
    %175 = arith.mulf %171, %171 : vector<4x1xf32>
    %176 = arith.subf %174, %175 : vector<4x1xf32>
    %cst_127 = arith.constant 9.99999974E-6 : f32
    %177 = vector.broadcast %cst_127 : f32 to vector<4x1xf32>
    %178 = arith.addf %176, %177 : vector<4x1xf32>
    %179 = math.rsqrt %178 : vector<4x1xf32>
    %c0_128 = arith.constant 0 : index
    %c0_129 = arith.constant 0 : index
    %c0_130 = arith.constant 0 : index
    %180 = vector.load %arg3[%c0_128, %c0_129, %c0_130] : memref<3x4x1xf32, #tpu.memory_space<vmem>>, vector<1x4x1xf32>
    %181 = vector.shape_cast %180 : vector<1x4x1xf32> to vector<4x1xf32>
    %182 = arith.mulf %181, %179 : vector<4x1xf32>
    %c0_131 = arith.constant 0 : index
    %c0_132 = arith.constant 0 : index
    %c0_133 = arith.constant 0 : index
    %183 = vector.load %arg4[%c0_131, %c0_132, %c0_133] : memref<3x4x1xf32, #tpu.memory_space<vmem>>, vector<1x4x1xf32>
    %184 = vector.shape_cast %183 : vector<1x4x1xf32> to vector<4x1xf32>
    %185 = arith.mulf %171, %182 : vector<4x1xf32>
    %186 = arith.subf %184, %185 : vector<4x1xf32>
    %187 = vector.broadcast %182 : vector<4x1xf32> to vector<4x512xf32>
    %188 = arith.mulf %164, %187 : vector<4x512xf32>
    %189 = vector.broadcast %186 : vector<4x1xf32> to vector<4x512xf32>
    %190 = arith.addf %188, %189 : vector<4x512xf32>
    %cst_134 = arith.constant 0.000000e+00 : f32
    %cst_135 = arith.constant 2.000000e+01 : f32
    %191 = vector.broadcast %cst_134 : f32 to vector<4x512xf32>
    %192 = arith.maximumf %191, %190 : vector<4x512xf32>
    %193 = vector.broadcast %cst_135 : f32 to vector<4x512xf32>
    %194 = arith.minimumf %193, %192 : vector<4x512xf32>
    %195 = arith.addf %194, %3 : vector<4x512xf32>
    %cst_136 = arith.constant 0.000000e+00 : f32
    %cst_137 = arith.constant 2.000000e+01 : f32
    %196 = vector.broadcast %cst_136 : f32 to vector<4x512xf32>
    %197 = arith.maximumf %196, %195 : vector<4x512xf32>
    %198 = vector.broadcast %cst_137 : f32 to vector<4x512xf32>
    %199 = arith.minimumf %198, %197 : vector<4x512xf32>
    %c0_138 = arith.constant 0 : index
    %c0_139 = arith.constant 0 : index
    %200 = vector.load %arg6[%c0_138, %c0_139] : memref<16x512xf32, #tpu.memory_space<vmem>>, vector<4x512xf32>
    tpu.vector_store %arg6[%c0_138, %c0_139], %199 {strides = array<i32>} : memref<16x512xf32, #tpu.memory_space<vmem>>, vector<4x512xf32>,
    %c1_140 = arith.constant 1 : index
    %c0_141 = arith.constant 0 : index
    %c0_142 = arith.constant 0 : index
    %201 = vector.load %arg3[%c1_140, %c0_141, %c0_142] : memref<3x4x1xf32, #tpu.memory_space<vmem>>, vector<1x4x1xf32>
    %202 = vector.shape_cast %201 : vector<1x4x1xf32> to vector<4x1xf32>
    %203 = arith.mulf %202, %179 : vector<4x1xf32>
    %c1_143 = arith.constant 1 : index
    %c0_144 = arith.constant 0 : index
    %c0_145 = arith.constant 0 : index
    %204 = vector.load %arg4[%c1_143, %c0_144, %c0_145] : memref<3x4x1xf32, #tpu.memory_space<vmem>>, vector<1x4x1xf32>
    %205 = vector.shape_cast %204 : vector<1x4x1xf32> to vector<4x1xf32>
    %206 = arith.mulf %171, %203 : vector<4x1xf32>
    %207 = arith.subf %205, %206 : vector<4x1xf32>
    %208 = vector.broadcast %203 : vector<4x1xf32> to vector<4x512xf32>
    %209 = arith.mulf %164, %208 : vector<4x512xf32>
    %210 = vector.broadcast %207 : vector<4x1xf32> to vector<4x512xf32>
    %211 = arith.addf %209, %210 : vector<4x512xf32>
    %cst_146 = arith.constant 0.000000e+00 : f32
    %cst_147 = arith.constant 2.000000e+01 : f32
    %212 = vector.broadcast %cst_146 : f32 to vector<4x512xf32>
    %213 = arith.maximumf %212, %211 : vector<4x512xf32>
    %214 = vector.broadcast %cst_147 : f32 to vector<4x512xf32>
    %215 = arith.minimumf %214, %213 : vector<4x512xf32>
    %216 = arith.addf %215, %4 : vector<4x512xf32>
    %cst_148 = arith.constant 0.000000e+00 : f32
    %cst_149 = arith.constant 2.000000e+01 : f32
    %217 = vector.broadcast %cst_148 : f32 to vector<4x512xf32>
    %218 = arith.maximumf %217, %216 : vector<4x512xf32>
    %219 = vector.broadcast %cst_149 : f32 to vector<4x512xf32>
    %220 = arith.minimumf %219, %218 : vector<4x512xf32>
    %c4_150 = arith.constant 4 : index
    %c0_151 = arith.constant 0 : index
    %221 = vector.load %arg6[%c4_150, %c0_151] : memref<16x512xf32, #tpu.memory_space<vmem>>, vector<4x512xf32>
    tpu.vector_store %arg6[%c4_150, %c0_151], %220 {strides = array<i32>} : memref<16x512xf32, #tpu.memory_space<vmem>>, vector<4x512xf32>,
    %c2_152 = arith.constant 2 : index
    %c0_153 = arith.constant 0 : index
    %c0_154 = arith.constant 0 : index
    %222 = vector.load %arg3[%c2_152, %c0_153, %c0_154] : memref<3x4x1xf32, #tpu.memory_space<vmem>>, vector<1x4x1xf32>
    %223 = vector.shape_cast %222 : vector<1x4x1xf32> to vector<4x1xf32>
    %224 = arith.mulf %223, %179 : vector<4x1xf32>
    %c2_155 = arith.constant 2 : index
    %c0_156 = arith.constant 0 : index
    %c0_157 = arith.constant 0 : index
    %225 = vector.load %arg4[%c2_155, %c0_156, %c0_157] : memref<3x4x1xf32, #tpu.memory_space<vmem>>, vector<1x4x1xf32>
    %226 = vector.shape_cast %225 : vector<1x4x1xf32> to vector<4x1xf32>
    %227 = arith.mulf %171, %224 : vector<4x1xf32>
    %228 = arith.subf %226, %227 : vector<4x1xf32>
    %229 = vector.broadcast %224 : vector<4x1xf32> to vector<4x512xf32>
    %230 = arith.mulf %164, %229 : vector<4x512xf32>
    %231 = vector.broadcast %228 : vector<4x1xf32> to vector<4x512xf32>
    %232 = arith.addf %230, %231 : vector<4x512xf32>
    %cst_158 = arith.constant 0.000000e+00 : f32
    %cst_159 = arith.constant 2.000000e+01 : f32
    %233 = vector.broadcast %cst_158 : f32 to vector<4x512xf32>
    %234 = arith.maximumf %233, %232 : vector<4x512xf32>
    %235 = vector.broadcast %cst_159 : f32 to vector<4x512xf32>
    %236 = arith.minimumf %235, %234 : vector<4x512xf32>
    %237 = arith.addf %236, %5 : vector<4x512xf32>
    %cst_160 = arith.constant 0.000000e+00 : f32
    %cst_161 = arith.constant 2.000000e+01 : f32
    %238 = vector.broadcast %cst_160 : f32 to vector<4x512xf32>
    %239 = arith.maximumf %238, %237 : vector<4x512xf32>
    %240 = vector.broadcast %cst_161 : f32 to vector<4x512xf32>
    %241 = arith.minimumf %240, %239 : vector<4x512xf32>
    %c8_162 = arith.constant 8 : index
    %c0_163 = arith.constant 0 : index
    %242 = vector.load %arg6[%c8_162, %c0_163] : memref<16x512xf32, #tpu.memory_space<vmem>>, vector<4x512xf32>
    tpu.vector_store %arg6[%c8_162, %c0_163], %241 {strides = array<i32>} : memref<16x512xf32, #tpu.memory_space<vmem>>, vector<4x512xf32>,
    %cst_164 = arith.constant 2.000000e+00 : f32
    %243 = vector.broadcast %cst_164 : f32 to vector<4x512xf32>
    %244 = arith.mulf %243, %6 : vector<4x512xf32>
    %cst_165 = arith.constant 0.000000e+00 : f32
    %cst_166 = arith.constant 2.000000e+01 : f32
    %245 = vector.broadcast %cst_165 : f32 to vector<4x512xf32>
    %246 = arith.maximumf %245, %244 : vector<4x512xf32>
    %247 = vector.broadcast %cst_166 : f32 to vector<4x512xf32>
    %248 = arith.minimumf %247, %246 : vector<4x512xf32>
    %c12_167 = arith.constant 12 : index
    %c0_168 = arith.constant 0 : index
    %249 = vector.load %arg6[%c12_167, %c0_168] : memref<16x512xf32, #tpu.memory_space<vmem>>, vector<4x512xf32>
    tpu.vector_store %arg6[%c12_167, %c0_168], %248 {strides = array<i32>} : memref<16x512xf32, #tpu.memory_space<vmem>>, vector<4x512xf32>,
    return
  }
  func.func @transform_0(%arg0: i32) -> (i32, i32) {
    %c0_i32 = arith.constant 0 : i32
    %c0_i32_0 = arith.constant 0 : i32
    %c0_i32_1 = arith.constant 0 : i32
    return %c0_i32, %c0_i32_0 : i32, i32
  }
  func.func @transform_1(%arg0: i32) -> (i32, i32, i32) {
    %c0_i32 = arith.constant 0 : i32
    %c0_i32_0 = arith.constant 0 : i32
    %c0_i32_1 = arith.constant 0 : i32
    %c0_i32_2 = arith.constant 0 : i32
    return %c0_i32, %c0_i32_0, %c0_i32_1 : i32, i32, i32
  }
  func.func @transform_2(%arg0: i32) -> (i32, i32, i32) {
    %c0_i32 = arith.constant 0 : i32
    %c0_i32_0 = arith.constant 0 : i32
    %c0_i32_1 = arith.constant 0 : i32
    %c0_i32_2 = arith.constant 0 : i32
    return %c0_i32, %c0_i32_0, %c0_i32_1 : i32, i32, i32
  }
  func.func @transform_3(%arg0: i32) -> (i32, i32, i32) {
    %c0_i32 = arith.constant 0 : i32
    %c0_i32_0 = arith.constant 0 : i32
    %c0_i32_1 = arith.constant 0 : i32
    %c0_i32_2 = arith.constant 0 : i32
    return %c0_i32, %c0_i32_0, %c0_i32_1 : i32, i32, i32
  }
  func.func @transform_4(%arg0: i32) -> (i32, i32) {
    %c0_i32 = arith.constant 0 : i32
    %c0_i32_0 = arith.constant 0 : i32
    %c0_i32_1 = arith.constant 0 : i32
    return %c0_i32, %c0_i32_0 : i32, i32
  }
  func.func @transform_5(%arg0: i32) -> (i32, i32) {
    %c0_i32 = arith.constant 0 : i32
    %c0_i32_0 = arith.constant 0 : i32
    %c0_i32_1 = arith.constant 0 : i32
    return %c0_i32, %c0_i32_0 : i32, i32
  }
}

</mosaic_0001>

<bundles_post_ra>
// kernel: basic_block_res2net34_double_forward.1
= control target key start
LH: loop header
LB: loop body
LE: loop exit
PB: predicated region body
PF: predicated region fallthrough
CT: control target
= control target key end

     0   :  { %s1710_s24 = smov 1   ;;  %s1711_s25 = smov 16   ;;  %v1717_v4 = vmov 0.0   ;;  %v68_v5 = vlaneseq  ;;  %vm291_vm8 = vcmask 326656   ;;  %vm453_vm9 = vcmask 1043456   ;;  %s2609_s0 = inlined_call_operand.vmem [shape: f32[16,512], index: 0, kind: input, shape index: {}]   ;;  %s2610_s4 = inlined_call_operand.vmem [shape: f32[40,512], index: 4, kind: input, shape index: {}]   ;;  %s2611_s1 = inlined_call_operand.vmem [shape: f32[3,4,40], index: 1, kind: input, shape index: {}]   ;;  %s2612_s2 = inlined_call_operand.vmem [shape: f32[3,4,1], index: 2, kind: input, shape index: {}]   ;;  %s2613_s3 = inlined_call_operand.vmem [shape: f32[3,4,1], index: 3, kind: input, shape index: {}]   ;;  %s2614_s5 = inlined_call_operand.vmem [shape: f32[16,512], index: 5, kind: output, shape index: {}]  }
   0x1   :  { %v1753_v0 = vld [vmem:[%s2609_s0] sm:$0xf]  ;;  %v1758_v1 = vld [vmem:[%s2609_s0 + $0x8] sm:$0xf]  ;;  %v1763_v2 = vld [vmem:[%s2609_s0 + $0x18] sm:$0xf]  ;;  %359 = vmatprep.mubr.f32.mxu0 %v1717_v4  ;;  %430 = vmatprep.mubr.f32.mxu1 %v1717_v4 }
   0x2   :  { %125 = vrot.lane.b32.xlu1 %v1753_v0, %s1710_s24  ;;  %154 = vst [vmem:[#allocation2 + $0x40] sm:$0xf] %v1753_v0  ;;  %79 = vrot.lane.b32.xlu0 %v1753_v0, %s1711_s25  ;;  %155 = vst [vmem:[#allocation2 + $0x48] sm:$0xf] %v1758_v1  ;;  %v1775_v3 = vld [vmem:[%s2609_s0 + $0x10] sm:$0xf] }
   0x3   :  { %157 = vst [vmem:[#allocation2 + $0x58] sm:$0xf] %v1763_v2  ;;  %156 = vst [vmem:[#allocation2 + $0x50] sm:$0xf] %v1775_v3  ;;  %s1712_s28 = smov 17   ;;  %s1713_s29 = smov 15  }
   0x4   :  { %s1714_s30 = smov 127   ;;  %s1715_s6 = smov 112   ;;  %21 = vst [vmem:[#allocation2 + $0x88] sm:$0xf0] %v1717_v4  ;;  %20 = vst [vmem:[#allocation2 + $0x80] sm:$0xf0] %v1717_v4 }
   0x5   :  { %s1716_s7 = smov 113   ;;  %22 = vst [vmem:[#allocation2 + $0x90] sm:$0xf0] %v1717_v4  ;;  %23 = vst [vmem:[#allocation2 + $0x98] sm:$0xf0] %v1717_v4  ;;  %s1718_s8 = smov 111  }
   0x6   :  { %127 = vrot.lane.b32.xlu1 %v1758_v1, %s1710_s24  ;;  %81 = vrot.lane.b32.xlu0 %v1758_v1, %s1711_s25  ;;  %v1844_v6 = vand.u32 127, %v68_v5  ;;  %v1874_v34 = vld [vmem:[%s2610_s4 + $0x8] sm:$0xff]  ;;  %v1896_v52 = vld [vmem:[%s2610_s4] sm:$0xff] }
   0x7   :  { %v1879_v35 = vld [vmem:[%s2610_s4 + $0x28] sm:$0xff]  ;;  %v1901_v53 = vld [vmem:[%s2610_s4 + $0x20] sm:$0xff] }
   0x8   :  { %vm133_vm0 = vcmp.lt.s32.totalorder %v1844_v6, 1  ;;  %vm87_vm1 = vcmp.lt.s32.totalorder %v1844_v6, 16  ;;  %vm70_vm2 = vcmp.lt.s32.totalorder %v1844_v6, 17  ;;  %vm116_vm3 = vcmp.lt.s32.totalorder %v1844_v6, 15 }
   0x9   :  { %vm166_vm4 = vcmp.lt.s32.totalorder %v1844_v6, 127  ;;  %vm212_vm5 = vcmp.lt.s32.totalorder %v1844_v6, 112  ;;  %vm195_vm6 = vcmp.lt.s32.totalorder %v1844_v6, 113  ;;  %vm241_vm7 = vcmp.lt.s32.totalorder %v1844_v6, 111  ;;  %v1704_v6 = vld [vmem:[%s2610_s4 + $0x50] sm:$0xff] }
   0xa   :  { %131 = vrot.lane.b32.xlu1 %v1763_v2, %s1710_s24  ;;  %85 = vrot.lane.b32.xlu0 %v1763_v2, %s1711_s25 }
   0xe   :  { %62 = vrot.lane.b32.xlu1 %v1758_v1, %s1712_s28  ;;  %60 = vrot.lane.b32.xlu0 %v1753_v0, %s1712_s28 }
  0x12   :  { %110 = vrot.lane.b32.xlu1 %v1758_v1, %s1713_s29  ;;  %108 = vrot.lane.b32.xlu0 %v1753_v0, %s1713_s29 }
  0x16   :  { %83 = vrot.lane.b32.xlu1 %v1775_v3, %s1711_s25  ;;  %66 = vrot.lane.b32.xlu0 %v1763_v2, %s1712_s28 }
  0x1a   :  { %129 = vrot.lane.b32.xlu1 %v1775_v3, %s1710_s24  ;;  %114 = vrot.lane.b32.xlu0 %v1763_v2, %s1713_s29 }
  0x1e   :  { %162 = vrot.lane.b32.xlu1 %v1775_v3, %s1714_s30  ;;  %160 = vrot.lane.b32.xlu0 %v1758_v1, %s1714_s30 }
  0x22   :  { %208 = vrot.lane.b32.xlu1 %v1775_v3, %s1715_s6  ;;  %206 = vrot.lane.b32.xlu0 %v1758_v1, %s1715_s6 }
  0x26   :  { %112 = vrot.lane.b32.xlu1 %v1775_v3, %s1713_s29  ;;  %64 = vrot.lane.b32.xlu0 %v1775_v3, %s1712_s28 }
  0x2a   :  { %204 = vrot.lane.b32.xlu1 %v1753_v0, %s1715_s6  ;;  %158 = vrot.lane.b32.xlu0 %v1753_v0, %s1714_s30 }
  0x2e   :  { %191 = vrot.lane.b32.xlu1 %v1775_v3, %s1716_s7  ;;  %189 = vrot.lane.b32.xlu0 %v1758_v1, %s1716_s7 }
  0x32   :  { %187 = vrot.lane.b32.xlu1 %v1753_v0, %s1716_s7  ;;  %164 = vrot.lane.b32.xlu0 %v1763_v2, %s1714_s30 }
  0x36   :  { %193 = vrot.lane.b32.xlu1 %v1763_v2, %s1716_s7  ;;  %210 = vrot.lane.b32.xlu0 %v1763_v2, %s1715_s6 }
  0x3a   :  { %237 = vrot.lane.b32.xlu1 %v1775_v3, %s1718_s8  ;;  %235 = vrot.lane.b32.xlu0 %v1758_v1, %s1718_s8 }
  0x3e   :  { %239 = vrot.lane.b32.xlu1 %v1763_v2, %s1718_s8  ;;  %233 = vrot.lane.b32.xlu0 %v1753_v0, %s1718_s8 }
  0x74   :  { %v126_v7 = vpop.permute.xlu1 %125  ;;  %v80_v8 = vpop.permute.xlu0 %79 }
  0x78   :  { %v128_v9 = vpop.permute.xlu1 %127  ;;  %v82_v10 = vpop.permute.xlu0 %81 }
  0x79   :  { %v136_v11 = vsel %vm133_vm0, %v126_v7, %v128_v9  ;;  %v90_v12 = vsel %vm87_vm1, %v80_v8, %v82_v10 }
  0x7a   :  { %v143_v13 = vrot.slane %v136_v11, 4  ;;  %v97_v14 = vrot.slane %v90_v12, 4 }
  0x7c   :  { %151 = vst [vmem:[#allocation2 + $0x28] sm:$0xf0] %v143_v13  ;;  %105 = vst [vmem:[#allocation2 + $0x8] sm:$0xf0] %v97_v14  ;;  %v132_v15 = vpop.permute.xlu1 %131  ;;  %v86_v16 = vpop.permute.xlu0 %85 }
  0x7d   :  { %v137_v17 = vsel %vm133_vm0, %v132_v15, %v126_v7  ;;  %v91_v18 = vsel %vm87_vm1, %v86_v16, %v80_v8 }
  0x7e   :  { %v142_v19 = vrot.slane %v137_v17, 4  ;;  %v96_v20 = vrot.slane %v91_v18, 4  ;;  %v1927_v17 = vld [vmem:[%s2610_s4 + $0x18] sm:$0xff] }
  0x7f   :  { %v1932_v18 = vld [vmem:[%s2610_s4 + $0x38] sm:$0xff] }
  0x80   :  { %150 = vst [vmem:[#allocation2 + $0x20] sm:$0xf0] %v142_v19  ;;  %104 = vst [vmem:[#allocation2] sm:$0xf0] %v96_v20  ;;  %v1857_v21 = vpop.permute.xlu1 %62  ;;  %v61_v22 = vpop.permute.xlu0 %60  ;;  %v1937_v19 = vld [vmem:[%s2610_s4 + $0x10] sm:$0xff] }
  0x81   :  { %v73_v23 = vsel %vm70_vm2, %v61_v22, %v1857_v21 }
  0x82   :  { %76 = vst [vmem:[#allocation2 + $0x8] sm:$0xf] %v73_v23 }
  0x84   :  { %v111_v24 = vpop.permute.xlu1 %110  ;;  %v109_v25 = vpop.permute.xlu0 %108 }
  0x85   :  { %v119_v26 = vsel %vm116_vm3, %v109_v25, %v111_v24 }
  0x86   :  { %122 = vst [vmem:[#allocation2 + $0x28] sm:$0xf] %v119_v26 }
  0x88   :  { %v84_v27 = vpop.permute.xlu1 %83  ;;  %v67_v28 = vpop.permute.xlu0 %66 }
  0x89   :  { %v88_v29 = vsel %vm87_vm1, %v84_v27, %v86_v16  ;;  %v89_v30 = vsel %vm87_vm1, %v82_v10, %v84_v27  ;;  %v74_v31 = vsel %vm70_vm2, %v67_v28, %v61_v22  ;;  %v251_v36 = vld [vmem:[#allocation2 + $0x8] sm:$0xff]  ;;  %v1942_v22 = vld [vmem:[%s2610_s4 + $0x30] sm:$0xff] }
  0x8a   :  { %v98_v32 = vrot.slane %v89_v30, 4  ;;  %v99_v33 = vrot.slane %v88_v29, 4  ;;  %75 = vst [vmem:[#allocation2] sm:$0xf] %v74_v31  ;;  %v271_v45 = vmul.f32 %v251_v36, %v1874_v34 }
  0x8c   :  { %106 = vst [vmem:[#allocation2 + $0x10] sm:$0xf0] %v98_v32  ;;  %107 = vst [vmem:[#allocation2 + $0x18] sm:$0xf0] %v99_v33  ;;  %v130_v37 = vpop.permute.xlu1 %129  ;;  %v115_v38 = vpop.permute.xlu0 %114 }
  0x8d   :  { %v134_v39 = vsel %vm133_vm0, %v130_v37, %v132_v15  ;;  %v135_v40 = vsel %vm133_vm0, %v128_v9, %v130_v37  ;;  %v120_v41 = vsel %vm116_vm3, %v115_v38, %v109_v25  ;;  %v255_v42 = vld [vmem:[#allocation2 + $0x28] sm:$0xff] }
  0x8e   :  { %v144_v43 = vrot.slane %v135_v40, 4  ;;  %v145_v44 = vrot.slane %v134_v39, 4  ;;  %121 = vst [vmem:[#allocation2 + $0x20] sm:$0xf] %v120_v41  ;;  %v275_v46 = vmul.f32 %v255_v42, %v1879_v35 }
  0x90   :  { %152 = vst [vmem:[#allocation2 + $0x30] sm:$0xf0] %v144_v43  ;;  %153 = vst [vmem:[#allocation2 + $0x38] sm:$0xf0] %v145_v44  ;;  %v163_v47 = vpop.permute.xlu1 %162  ;;  %v161_v48 = vpop.permute.xlu0 %160  ;;  %v1622_v49 = vpack.c.bf16 %v275_v46, %v271_v45  ;;  %v1959_v43 = vld [vmem:[%s2610_s4 + $0x48] sm:$0xff] }
  0x91   :  { %v168_v50 = vsel %vm166_vm4, %v161_v48, %v163_v47  ;;  %v250_v54 = vld [vmem:[#allocation2] sm:$0xff]  ;;  %v1964_v44 = vld [vmem:[%s2610_s4 + $0x68] sm:$0xff] }
  0x92   :  { %v176_v51 = vrot.slane %v168_v50, 4  ;;  %1623 = vmatprep.subr.bf16.mxu0 %v1622_v49  ;;  %v270_v60 = vmul.f32 %v250_v54, %v1896_v52 }
  0x94   :  { %184 = vst [vmem:[#allocation2 + $0x48] sm:$0xf0] %v176_v51  ;;  %v1903_v55 = vpop.permute.xlu1 %208  ;;  %v207_v56 = vpop.permute.xlu0 %206 }
  0x95   :  { %v214_v57 = vsel %vm212_vm5, %v207_v56, %v1903_v55  ;;  %v254_v58 = vld [vmem:[#allocation2 + $0x20] sm:$0xff] }
  0x96   :  { %v222_v59 = vrot.slane %v214_v57, 4  ;;  %v274_v61 = vmul.f32 %v254_v58, %v1901_v53 }
  0x98   :  { %230 = vst [vmem:[#allocation2 + $0x68] sm:$0xf0] %v222_v59  ;;  %v113_v62 = vpop.permute.xlu1 %112  ;;  %v65_v63 = vpop.permute.xlu0 %64  ;;  %v1624_v5 = vpack.c.bf16 %v274_v61, %v270_v60  ;;  %v1981_v60 = vld [vmem:[%s2610_s4 + $0x40] sm:$0xff] }
  0x99   :  { %v117_v7 = vsel %vm116_vm3, %v113_v62, %v115_v38  ;;  %v118_v8 = vsel %vm116_vm3, %v111_v24, %v113_v62  ;;  %v71_v9 = vsel %vm70_vm2, %v65_v63, %v67_v28  ;;  %v72_v10 = vsel %vm70_vm2, %v1857_v21, %v65_v63 }
  0x9a   :  { %123 = vst [vmem:[#allocation2 + $0x30] sm:$0xf] %v118_v8  ;;  %124 = vst [vmem:[#allocation2 + $0x38] sm:$0xf] %v117_v7  ;;  %1625 = vmatpush1.bf16.msra.mxu0 %v1624_v5 }
  0x9b   :  { %77 = vst [vmem:[#allocation2 + $0x10] sm:$0xf] %v72_v10  ;;  %78 = vst [vmem:[#allocation2 + $0x18] sm:$0xf] %v71_v9  ;;  %v259_v45 = vld [vmem:[#allocation2 + $0x48] sm:$0xff] }
  0x9c   :  { %v205_v11 = vpop.permute.xlu1 %204  ;;  %v159_v12 = vpop.permute.xlu0 %158  ;;  %v279_v58 = vmul.f32 %v259_v45, %v1959_v43 }
  0x9d   :  { %v215_v13 = vsel %vm212_vm5, %v205_v11, %v207_v56  ;;  %v169_v14 = vsel %vm166_vm4, %v159_v12, %v161_v48 }
  0x9e   :  { %v221_v15 = vrot.slane %v215_v13, 4  ;;  %v175_v16 = vrot.slane %v169_v14, 4  ;;  %v1995_v14 = vld [vmem:[%s2610_s4 + $0x58] sm:$0xff] }
  0xa0   :  { %229 = vst [vmem:[#allocation2 + $0x60] sm:$0xf0] %v221_v15  ;;  %183 = vst [vmem:[#allocation2 + $0x40] sm:$0xf0] %v175_v16  ;;  %v192_v20 = vpop.permute.xlu1 %191  ;;  %v190_v21 = vpop.permute.xlu0 %189  ;;  %v2000_v15 = vld [vmem:[%s2610_s4 + $0x78] sm:$0xff]  ;;  %v2005_v16 = vld [vmem:[%s2610_s4 + $0x50] sm:$0xff] }
  0xa1   :  { %v197_v23 = vsel %vm195_vm6, %v190_v21, %v192_v20  ;;  %v257_v25 = vld [vmem:[#allocation2 + $0x38] sm:$0xff]  ;;  %v256_v29 = vld [vmem:[#allocation2 + $0x30] sm:$0xff] }
  0xa2   :  { %v253_v24 = vld [vmem:[#allocation2 + $0x18] sm:$0xff]  ;;  %v252_v26 = vld [vmem:[#allocation2 + $0x10] sm:$0xff]  ;;  %201 = vst [vmem:[#allocation2 + $0x68] sm:$0xf] %v197_v23  ;;  %v277_v28 = vmul.f32 %v257_v25, %v1932_v18  ;;  %v276_v31 = vmul.f32 %v256_v29, %v1942_v22 }
  0xa3   :  { %v273_v27 = vmul.f32 %v253_v24, %v1927_v17  ;;  %v272_v30 = vmul.f32 %v252_v26, %v1937_v19  ;;  %v2016_v25 = vld [vmem:[%s2610_s4 + $0x70] sm:$0xff] }
  0xa4   :  { %v188_v32 = vpop.permute.xlu1 %187  ;;  %v165_v33 = vpop.permute.xlu0 %164 }
  0xa5   :  { %v1630_v36 = vpack.c.bf16 %v277_v28, %v273_v27  ;;  %v198_v37 = vsel %vm195_vm6, %v188_v32, %v190_v21  ;;  %v167_v38 = vsel %vm166_vm4, %v163_v47, %v165_v33  ;;  %v170_v39 = vsel %vm166_vm4, %v165_v33, %v159_v12  ;;  %v2021_v27 = vld [vmem:[%s2610_s4 + $0x88] sm:$0xff] }
  0xa6   :  { %v1632_v40 = vpack.c.bf16 %v276_v31, %v272_v30  ;;  %200 = vst [vmem:[#allocation2 + $0x60] sm:$0xf] %v198_v37  ;;  %v177_v41 = vrot.slane %v167_v38, 4  ;;  %v178_v42 = vrot.slane %v170_v39, 4 }
  0xa7   :  { %1631 = vmatprep.subr.bf16.mxu1 %v1630_v36  ;;  %v258_v61 = vld [vmem:[#allocation2 + $0x40] sm:$0xff] }
  0xa8   :  { %1633 = vmatpush1.bf16.msra.mxu1 %v1632_v40  ;;  %185 = vst [vmem:[#allocation2 + $0x50] sm:$0xf0] %v177_v41  ;;  %186 = vst [vmem:[#allocation2 + $0x58] sm:$0xf0] %v178_v42  ;;  %v194_v46 = vpop.permute.xlu1 %193  ;;  %v211_v47 = vpop.permute.xlu0 %210  ;;  %v278_v9 = vmul.f32 %v258_v61, %v1981_v60  ;;  %v2031_v40 = vld [vmem:[%s2610_s4 + $0x80] sm:$0xff]  ;;  %v2036_v41 = vld [vmem:[%s2610_s4 + $0x98] sm:$0xff] }
  0xa9   :  { %v196_v48 = vsel %vm195_vm6, %v192_v20, %v194_v46  ;;  %v199_v49 = vsel %vm195_vm6, %v194_v46, %v188_v32  ;;  %v213_v50 = vsel %vm212_vm5, %v1903_v55, %v211_v47  ;;  %v216_v51 = vsel %vm212_vm5, %v211_v47, %v205_v11  ;;  %v263_v54 = vld [vmem:[#allocation2 + $0x68] sm:$0xff]  ;;  %v1986_v55 = vld [vmem:[%s2610_s4 + $0x60] sm:$0xff]  ;;  %v2041_v42 = vld [vmem:[%s2610_s4 + $0x90] sm:$0xff] }
  0xaa   :  { %202 = vst [vmem:[#allocation2 + $0x70] sm:$0xf] %v196_v48  ;;  %203 = vst [vmem:[#allocation2 + $0x78] sm:$0xf] %v199_v49  ;;  %v223_v56 = vrot.slane %v213_v50, 4  ;;  %v224_v57 = vrot.slane %v216_v51, 4  ;;  %v283_v59 = vmul.f32 %v263_v54, %v1964_v44 }
  0xab   :  { %v290_v50 = vld [vmem:[%s2611_s1] sm:$0xf] }
  0xac   :  { %231 = vst [vmem:[#allocation2 + $0x70] sm:$0xf0] %v223_v56  ;;  %232 = vst [vmem:[#allocation2 + $0x78] sm:$0xf0] %v224_v57  ;;  %v238_v62 = vpop.permute.xlu1 %237  ;;  %v236_v63 = vpop.permute.xlu0 %235  ;;  %v1626_v5 = vpack.c.bf16 %v283_v59, %v279_v58 }
  0xad   :  { %v243_v7 = vsel %vm241_vm7, %v236_v63, %v238_v62  ;;  %v262_v8 = vld [vmem:[#allocation2 + $0x60] sm:$0xff] }
  0xae   :  { %247 = vst [vmem:[#allocation2 + $0x88] sm:$0xf] %v243_v7  ;;  %1627 = vmatprep.subr.bf16.mxu0 %v1626_v5  ;;  %v282_v10 = vmul.f32 %v262_v8, %v1986_v55 }
  0xaf   :  { %v261_v24 = vld [vmem:[#allocation2 + $0x58] sm:$0xff]  ;;  %v260_v26 = vld [vmem:[#allocation2 + $0x50] sm:$0xff] }
  0xb0   :  { %v240_v11 = vpop.permute.xlu1 %239  ;;  %v234_v12 = vpop.permute.xlu0 %233  ;;  %v1628_v13 = vpack.c.bf16 %v282_v10, %v278_v9  ;;  %v281_v30 = vmul.f32 %v261_v24, %v1995_v14  ;;  %v280_v32 = vmul.f32 %v260_v26, %v2005_v16  ;;  %v1719_v24 = vmov 0  }
  0xb1   :  { %v242_v20 = vsel %vm241_vm7, %v238_v62, %v240_v11  ;;  %v244_v21 = vsel %vm241_vm7, %v234_v12, %v236_v63  ;;  %v245_v23 = vsel %vm241_vm7, %v240_v11, %v234_v12  ;;  %1680 = vset.pattern.permute.xlu1 %v1719_v24  ;;  %1681 = vset.pattern.permute.xlu0 %v1719_v24 }
  0xb2   :  { %248 = vst [vmem:[#allocation2 + $0x90] sm:$0xf] %v242_v20  ;;  %246 = vst [vmem:[#allocation2 + $0x80] sm:$0xf] %v244_v21  ;;  %1629 = vmatpush1.bf16.msra.mxu0 %v1628_v13 }
  0xb3   :  { %249 = vst [vmem:[#allocation2 + $0x98] sm:$0xf] %v245_v23  ;;  %v265_v28 = vld [vmem:[#allocation2 + $0x78] sm:$0xff]  ;;  %v264_v29 = vld [vmem:[#allocation2 + $0x70] sm:$0xff] }
  0xb4   :  { %v285_v31 = vmul.f32 %v265_v28, %v2000_v15  ;;  %v284_v33 = vmul.f32 %v264_v29, %v2016_v25 }
  0xb5   :  { %v267_v36 = vld [vmem:[#allocation2 + $0x88] sm:$0xff] }
  0xb6   :  { %v287_v37 = vmul.f32 %v267_v36, %v2021_v27  ;;  %v1634_v38 = vpack.c.bf16 %v285_v31, %v281_v30  ;;  %v1636_v39 = vpack.c.bf16 %v284_v33, %v280_v32  ;;  %v469_v36 = vld [vmem:[%s2612_s2] sm:$0xf] }
  0xb8   :  { %303 = vmatprep.subr.mxu0 %v287_v37  ;;  %1635 = vmatprep.subr.bf16.mxu1 %v1634_v38 }
  0xb9   :  { %1637 = vmatpush1.bf16.msra.mxu1 %v1636_v39  ;;  %v266_v45 = vld [vmem:[#allocation2 + $0x80] sm:$0xff]  ;;  %v268_v47 = vld [vmem:[#allocation2 + $0x90] sm:$0xff] }
  0xba   :  { %v269_v46 = vld [vmem:[#allocation2 + $0x98] sm:$0xff]  ;;  %v286_v48 = vmul.f32 %v266_v45, %v2031_v40  ;;  %v288_v51 = vmul.f32 %v268_v47, %v2041_v42  ;;  %v476_v39 = vld [vmem:[%s2613_s3] sm:$0xf] }
  0xbb   :  { %v289_v49 = vmul.f32 %v269_v46, %v2036_v41 }
  0xbc   :  { %304 = vmatpush1.msra.mxu0 %v286_v48  ;;  %v2066_v48 = vld [vmem:[%s2609_s0] sm:$0xf0] }
  0xbd   :  { %374 = vmatprep.subr.mxu1 %v289_v49  ;;  %1606 = vmatmul.mubr.msk.f32.vlgmr.msra.gmra.mrb[0].mxu0 %vm291_vm8, %v290_v50 }
  0xbe   :  { %375 = vmatpush1.msra.mxu1 %v288_v51  ;;  %810 = vmatprep.mubr.f32.mxu0 %v1717_v4 }
  0xbf   :  { %1607 = vmatmul.mubr.msk.f32.vlgmr.msra.gmra.mrb[0].mxu1 %vm291_vm8, %v290_v50 }
  0xc0   :  { %881 = vmatprep.mubr.f32.mxu1 %v1717_v4 }
 0x190   :  { %v361_v54 = vpop.f32.mrb[0].mxu0 }
 0x191   :  { %v437_v56 = vmul.f32 %v361_v54, %v361_v54  ;;  %v363_v57 = vpop.f32.mrb[1].mxu0 }
 0x192   :  { %v432_v58 = vpop.f32.mrb[0].mxu1  ;;  %v438_v59 = vmul.f32 %v363_v57, %v363_v57 }
 0x193   :  { %v439_v61 = vmul.f32 %v432_v58, %v432_v58  ;;  %v434_v62 = vpop.f32.mrb[1].mxu1  ;;  %v445_v63 = vrot.slane %v437_v56, 4 }
 0x194   :  { %v440_v5 = vmul.f32 %v434_v62, %v434_v62  ;;  %v446_v7 = vrot.slane %v438_v59, 4  ;;  %v2071_v59 = vld [vmem:[%s2609_s0 + $0x8] sm:$0xf0] }
 0x195   :  { %v447_v8 = vrot.slane %v439_v61, 4  ;;  %v454_v9 = vsel %vm453_vm9, %v361_v54, %v445_v63  ;;  %v2076_v61 = vld [vmem:[%s2609_s0 + $0x10] sm:$0xf0]  ;;  %v2081_v63 = vld [vmem:[%s2609_s0 + $0x18] sm:$0xf0] }
 0x196   :  { %v455_v10 = vsel %vm453_vm9, %v363_v57, %v446_v7  ;;  %v448_v11 = vrot.slane %v440_v5, 4  ;;  %v509_v7 = vrot.slane %v2066_v48, 4 }
 0x197   :  { %v458_v12 = vadd.f32 %v455_v10, %v454_v9  ;;  %v456_v13 = vsel %vm453_vm9, %v432_v58, %v447_v8  ;;  %v510_v8 = vrot.slane %v2071_v59, 4  ;;  %v511_v9 = vrot.slane %v2076_v61, 4 }
 0x198   :  { %v457_v21 = vsel %vm453_vm9, %v434_v62, %v448_v11  ;;  %v512_v10 = vrot.slane %v2081_v63, 4 }
 0x199   :  { %v459_v20 = vadd.f32 %v458_v12, %v456_v13 }
 0x19b   :  { %v460_v23 = vadd.f32 %v459_v20, %v457_v21 }
 0x19d   :  { %461 = vadd.xlane.f32.xlu0 %v460_v23 }
 0x22a   :  { %v462_v26 = vpop.xlane.xlu0 %461 }
 0x22b   :  { %v463_v28 = vmul.f32 0.001953125, %v462_v26 }
 0x22d   :  { %v464_v29 = vmul.f32 %v463_v28, %v463_v28 }
 0x22f   :  { %v466_v30 = vrot.slane %v464_v29, 4 }
 0x231   :  { %v468_v31 = vsub.f32 %v463_v28, %v466_v30 }
 0x233   :  { %v470_v32 = vadd.f32 1e-05, %v468_v31 }
 0x235   :  { %1682 = vrsqrt.f32 %v470_v32 }
 0x23f   :  { %v1683_v33 = vpop.eup %1682 }
 0x240   :  { %v473_v37 = vrot.slane %v1683_v33, 4 }
 0x242   :  { %v475_v38 = vmul.f32 %v473_v37, %v469_v36 }
 0x244   :  { %481 = vperm.xlu1 %1680, %v475_v38   ;;  %v477_v45 = vmul.f32 %v475_v38, %v463_v28 }
 0x246   :  { %v478_v46 = vsub.f32 %v476_v39, %v477_v45 }
 0x248   :  { %490 = vperm.xlu1 %1680, %v478_v46  }
 0x2c3   :  { %v482_v47 = vpop.permute.xlu1 %481 }
 0x2c4   :  { %v484_v49 = vmul.f32 %v482_v47, %v361_v54  ;;  %v485_v50 = vmul.f32 %v482_v47, %v363_v57  ;;  %v486_v51 = vmul.f32 %v482_v47, %v432_v58  ;;  %v487_v56 = vmul.f32 %v482_v47, %v434_v62 }
 0x2c7   :  { %v491_v5 = vpop.permute.xlu1 %490 }
 0x2c8   :  { %v493_v54 = vadd.f32 %v491_v5, %v484_v49  ;;  %v494_v57 = vadd.f32 %v491_v5, %v485_v50  ;;  %v495_v58 = vadd.f32 %v491_v5, %v486_v51  ;;  %v496_v62 = vadd.f32 %v491_v5, %v487_v56 }
 0x2ca   :  { %v497_v11 = vmax.f32 %v493_v54, 0.0  ;;  %v498_v12 = vmax.f32 %v494_v57, 0.0  ;;  %v499_v13 = vmax.f32 %v495_v58, 0.0  ;;  %v500_v20 = vmax.f32 %v496_v62, 0.0 }
 0x2cc   :  { %v501_v21 = vmin.f32 %v497_v11, 20.0  ;;  %v502_v23 = vmin.f32 %v498_v12, 20.0  ;;  %v503_v24 = vmin.f32 %v499_v13, 20.0  ;;  %v504_v26 = vmin.f32 %v500_v20, 20.0 }
 0x2ce   :  { %v517_v28 = vadd.f32 %v509_v7, %v501_v21  ;;  %v518_v29 = vadd.f32 %v510_v8, %v502_v23  ;;  %v519_v30 = vadd.f32 %v511_v9, %v503_v24  ;;  %v520_v31 = vadd.f32 %v512_v10, %v504_v26 }
 0x2d0   :  { %609 = vst [vmem:[#allocation2 + $0x40] sm:$0xf] %v517_v28  ;;  %610 = vst [vmem:[#allocation2 + $0x48] sm:$0xf] %v518_v29  ;;  %521 = vrot.lane.b32.xlu0 %v517_v28, %s1712_s28  ;;  %537 = vrot.lane.b32.xlu1 %v517_v28, %s1711_s25 }
 0x2d1   :  { %611 = vst [vmem:[#allocation2 + $0x50] sm:$0xf] %v519_v30  ;;  %612 = vst [vmem:[#allocation2 + $0x58] sm:$0xf] %v520_v31 }
 0x2d4   :  { %585 = vrot.lane.b32.xlu0 %v519_v30, %s1710_s24  ;;  %539 = vrot.lane.b32.xlu1 %v518_v29, %s1711_s25 }
 0x2d8   :  { %617 = vrot.lane.b32.xlu0 %v519_v30, %s1714_s30  ;;  %581 = vrot.lane.b32.xlu1 %v517_v28, %s1710_s24 }
 0x2dc   :  { %661 = vrot.lane.b32.xlu0 %v519_v30, %s1715_s6  ;;  %583 = vrot.lane.b32.xlu1 %v518_v29, %s1710_s24 }
 0x2e0   :  { %569 = vrot.lane.b32.xlu0 %v519_v30, %s1713_s29  ;;  %543 = vrot.lane.b32.xlu1 %v520_v31, %s1711_s25 }
 0x2e4   :  { %657 = vrot.lane.b32.xlu0 %v517_v28, %s1715_s6  ;;  %587 = vrot.lane.b32.xlu1 %v520_v31, %s1710_s24 }
 0x2e8   :  { %645 = vrot.lane.b32.xlu0 %v519_v30, %s1716_s7  ;;  %523 = vrot.lane.b32.xlu1 %v518_v29, %s1712_s28 }
 0x2ec   :  { %641 = vrot.lane.b32.xlu0 %v517_v28, %s1716_s7  ;;  %565 = vrot.lane.b32.xlu1 %v517_v28, %s1713_s29 }
 0x2f0   :  { %647 = vrot.lane.b32.xlu0 %v520_v31, %s1716_s7  ;;  %567 = vrot.lane.b32.xlu1 %v518_v29, %s1713_s29 }
 0x2f4   :  { %689 = vrot.lane.b32.xlu0 %v519_v30, %s1718_s8  ;;  %527 = vrot.lane.b32.xlu1 %v520_v31, %s1712_s28 }
 0x2f8   :  { %691 = vrot.lane.b32.xlu0 %v520_v31, %s1718_s8  ;;  %541 = vrot.lane.b32.xlu1 %v519_v30, %s1711_s25 }
 0x2fc   :  { %571 = vrot.lane.b32.xlu1 %v520_v31, %s1713_s29 }
 0x300   :  { %615 = vrot.lane.b32.xlu1 %v518_v29, %s1714_s30 }
 0x304   :  { %659 = vrot.lane.b32.xlu1 %v518_v29, %s1715_s6 }
 0x308   :  { %525 = vrot.lane.b32.xlu1 %v519_v30, %s1712_s28 }
 0x30c   :  { %613 = vrot.lane.b32.xlu1 %v517_v28, %s1714_s30 }
 0x310   :  { %643 = vrot.lane.b32.xlu1 %v518_v29, %s1716_s7 }
 0x314   :  { %619 = vrot.lane.b32.xlu1 %v520_v31, %s1714_s30 }
 0x318   :  { %663 = vrot.lane.b32.xlu1 %v520_v31, %s1715_s6 }
 0x31c   :  { %687 = vrot.lane.b32.xlu1 %v518_v29, %s1718_s8 }
 0x320   :  { %685 = vrot.lane.b32.xlu1 %v517_v28, %s1718_s8 }
 0x342   :  { %v522_v32 = vpop.permute.xlu0 %521  ;;  %v538_v33 = vpop.permute.xlu1 %537 }
 0x346   :  { %v586_v36 = vpop.permute.xlu0 %585  ;;  %v540_v37 = vpop.permute.xlu1 %539 }
 0x347   :  { %v547_v38 = vsel %vm87_vm1, %v538_v33, %v540_v37 }
 0x348   :  { %v554_v39 = vrot.slane %v547_v38, 4 }
 0x34a   :  { %562 = vst [vmem:[#allocation2 + $0x8] sm:$0xf0] %v554_v39  ;;  %v2129_v45 = vpop.permute.xlu0 %617  ;;  %v582_v46 = vpop.permute.xlu1 %581 }
 0x34e   :  { %v2131_v47 = vpop.permute.xlu0 %661  ;;  %v584_v49 = vpop.permute.xlu1 %583 }
 0x34f   :  { %v590_v50 = vsel %vm133_vm0, %v584_v49, %v586_v36  ;;  %v591_v51 = vsel %vm133_vm0, %v582_v46, %v584_v49 }
 0x350   :  { %v598_v56 = vrot.slane %v591_v51, 4  ;;  %v599_v5 = vrot.slane %v590_v50, 4 }
 0x352   :  { %606 = vst [vmem:[#allocation2 + $0x28] sm:$0xf0] %v598_v56  ;;  %607 = vst [vmem:[#allocation2 + $0x30] sm:$0xf0] %v599_v5  ;;  %v570_v54 = vpop.permute.xlu0 %569  ;;  %v544_v57 = vpop.permute.xlu1 %543 }
 0x353   :  { %v548_v58 = vsel %vm87_vm1, %v544_v57, %v538_v33 }
 0x354   :  { %v553_v62 = vrot.slane %v548_v58, 4 }
 0x356   :  { %561 = vst [vmem:[#allocation2] sm:$0xf0] %v553_v62  ;;  %v2139_v11 = vpop.permute.xlu0 %657  ;;  %v588_v12 = vpop.permute.xlu1 %587 }
 0x357   :  { %v589_v13 = vsel %vm133_vm0, %v586_v36, %v588_v12  ;;  %v592_v20 = vsel %vm133_vm0, %v588_v12, %v582_v46 }
 0x358   :  { %v597_v21 = vrot.slane %v592_v20, 4  ;;  %v600_v23 = vrot.slane %v589_v13, 4 }
 0x35a   :  { %605 = vst [vmem:[#allocation2 + $0x20] sm:$0xf0] %v597_v21  ;;  %608 = vst [vmem:[#allocation2 + $0x38] sm:$0xf0] %v600_v23  ;;  %v2145_v24 = vpop.permute.xlu0 %645  ;;  %v524_v26 = vpop.permute.xlu1 %523 }
 0x35b   :  { %v531_v28 = vsel %vm70_vm2, %v522_v32, %v524_v26 }
 0x35c   :  { %534 = vst [vmem:[#allocation2 + $0x8] sm:$0xf] %v531_v28 }
 0x35e   :  { %v2149_v29 = vpop.permute.xlu0 %641  ;;  %v566_v30 = vpop.permute.xlu1 %565 }
 0x362   :  { %v648_v31 = vpop.permute.xlu0 %647  ;;  %v568_v33 = vpop.permute.xlu1 %567 }
 0x363   :  { %v649_v36 = vsel %vm195_vm6, %v2145_v24, %v648_v31  ;;  %v652_v38 = vsel %vm195_vm6, %v648_v31, %v2149_v29  ;;  %v574_v39 = vsel %vm116_vm3, %v568_v33, %v570_v54  ;;  %v575_v46 = vsel %vm116_vm3, %v566_v30, %v568_v33  ;;  %v702_v56 = vld [vmem:[#allocation2 + $0x8] sm:$0xff] }
 0x364   :  { %655 = vst [vmem:[#allocation2 + $0x70] sm:$0xf] %v649_v36  ;;  %656 = vst [vmem:[#allocation2 + $0x78] sm:$0xf] %v652_v38  ;;  %v722_v23 = vmul.f32 %v702_v56, %v1874_v34 }
 0x365   :  { %578 = vst [vmem:[#allocation2 + $0x28] sm:$0xf] %v575_v46  ;;  %579 = vst [vmem:[#allocation2 + $0x30] sm:$0xf] %v574_v39 }
 0x366   :  { %v2161_v49 = vpop.permute.xlu0 %689  ;;  %v528_v50 = vpop.permute.xlu1 %527 }
 0x367   :  { %v532_v51 = vsel %vm70_vm2, %v528_v50, %v522_v32 }
 0x368   :  { %533 = vst [vmem:[#allocation2] sm:$0xf] %v532_v51 }
 0x36a   :  { %v2165_v5 = vpop.permute.xlu0 %691  ;;  %v542_v58 = vpop.permute.xlu1 %541 }
 0x36b   :  { %v693_v62 = vsel %vm241_vm7, %v2161_v49, %v2165_v5  ;;  %v545_v12 = vsel %vm87_vm1, %v542_v58, %v544_v57  ;;  %v546_v13 = vsel %vm87_vm1, %v540_v37, %v542_v58 }
 0x36c   :  { %v706_v20 = vld [vmem:[#allocation2 + $0x28] sm:$0xff]  ;;  %699 = vst [vmem:[#allocation2 + $0x90] sm:$0xf] %v693_v62  ;;  %v555_v21 = vrot.slane %v546_v13, 4  ;;  %v556_v32 = vrot.slane %v545_v12, 4 }
 0x36d   :  { %v726_v28 = vmul.f32 %v706_v20, %v1879_v35 }
 0x36e   :  { %563 = vst [vmem:[#allocation2 + $0x10] sm:$0xf0] %v555_v21  ;;  %564 = vst [vmem:[#allocation2 + $0x18] sm:$0xf0] %v556_v32  ;;  %v572_v31 = vpop.permute.xlu1 %571 }
 0x36f   :  { %v1638_v33 = vpack.c.bf16 %v726_v28, %v722_v23  ;;  %v573_v36 = vsel %vm116_vm3, %v570_v54, %v572_v31  ;;  %v576_v57 = vsel %vm116_vm3, %v572_v31, %v566_v30  ;;  %v701_v35 = vld [vmem:[#allocation2] sm:$0xff] }
 0x370   :  { %577 = vst [vmem:[#allocation2 + $0x20] sm:$0xf] %v576_v57  ;;  %580 = vst [vmem:[#allocation2 + $0x38] sm:$0xf] %v573_v36  ;;  %v721_v58 = vmul.f32 %v701_v35, %v1896_v52 }
 0x371   :  { %1639 = vmatprep.subr.bf16.mxu0 %v1638_v33 }
 0x372   :  { %v616_v37 = vpop.permute.xlu1 %615 }
 0x373   :  { %v622_v34 = vsel %vm166_vm4, %v616_v37, %v2129_v45 }
 0x374   :  { %v630_v38 = vrot.slane %v622_v34, 4 }
 0x376   :  { %638 = vst [vmem:[#allocation2 + $0x48] sm:$0xf0] %v630_v38  ;;  %v660_v39 = vpop.permute.xlu1 %659 }
 0x377   :  { %v666_v46 = vsel %vm212_vm5, %v660_v39, %v2131_v47  ;;  %v667_v54 = vsel %vm212_vm5, %v2139_v11, %v660_v39  ;;  %v705_v30 = vld [vmem:[#allocation2 + $0x20] sm:$0xff]  ;;  %v708_v28 = vld [vmem:[#allocation2 + $0x38] sm:$0xff] }
 0x378   :  { %v673_v51 = vrot.slane %v667_v54, 4  ;;  %v674_v56 = vrot.slane %v666_v46, 4  ;;  %v725_v62 = vmul.f32 %v705_v30, %v1901_v53  ;;  %v707_v53 = vld [vmem:[#allocation2 + $0x30] sm:$0xff] }
 0x379   :  { %v727_v38 = vmul.f32 %v707_v53, %v1942_v22 }
 0x37a   :  { %681 = vst [vmem:[#allocation2 + $0x60] sm:$0xf0] %v673_v51  ;;  %682 = vst [vmem:[#allocation2 + $0x68] sm:$0xf0] %v674_v56  ;;  %v526_v12 = vpop.permute.xlu1 %525  ;;  %v1640_v13 = vpack.c.bf16 %v725_v62, %v721_v58 }
 0x37b   :  { %v529_v20 = vsel %vm70_vm2, %v526_v12, %v528_v50  ;;  %v530_v21 = vsel %vm70_vm2, %v524_v26, %v526_v12 }
 0x37c   :  { %535 = vst [vmem:[#allocation2 + $0x10] sm:$0xf] %v530_v21  ;;  %536 = vst [vmem:[#allocation2 + $0x18] sm:$0xf] %v529_v20  ;;  %1641 = vmatpush1.bf16.msra.mxu0 %v1640_v13 }
 0x37e   :  { %v614_v32 = vpop.permute.xlu1 %613 }
 0x37f   :  { %v623_v23 = vsel %vm166_vm4, %v614_v32, %v616_v37  ;;  %v728_v37 = vmul.f32 %v708_v28, %v1932_v18 }
 0x380   :  { %v629_v52 = vrot.slane %v623_v23, 4 }
 0x382   :  { %637 = vst [vmem:[#allocation2 + $0x40] sm:$0xf0] %v629_v52  ;;  %v644_v31 = vpop.permute.xlu1 %643 }
 0x383   :  { %v650_v33 = vsel %vm195_vm6, %v644_v31, %v2145_v24  ;;  %v651_v26 = vsel %vm195_vm6, %v2149_v29, %v644_v31  ;;  %v704_v50 = vld [vmem:[#allocation2 + $0x18] sm:$0xff]  ;;  %v703_v36 = vld [vmem:[#allocation2 + $0x10] sm:$0xff] }
 0x384   :  { %653 = vst [vmem:[#allocation2 + $0x60] sm:$0xf] %v651_v26  ;;  %654 = vst [vmem:[#allocation2 + $0x68] sm:$0xf] %v650_v33  ;;  %v724_v57 = vmul.f32 %v704_v50, %v1927_v17  ;;  %v723_v34 = vmul.f32 %v703_v36, %v1937_v19  ;;  %v710_v17 = vld [vmem:[#allocation2 + $0x48] sm:$0xff] }
 0x385   :  { %v730_v56 = vmul.f32 %v710_v17, %v1959_v43 }
 0x386   :  { %v620_v35 = vpop.permute.xlu1 %619  ;;  %v1646_v39 = vpack.c.bf16 %v728_v37, %v724_v57  ;;  %v1648_v46 = vpack.c.bf16 %v727_v38, %v723_v34 }
 0x387   :  { %v621_v24 = vsel %vm166_vm4, %v2129_v45, %v620_v35  ;;  %v624_v29 = vsel %vm166_vm4, %v620_v35, %v614_v32 }
 0x388   :  { %v631_v54 = vrot.slane %v621_v24, 4  ;;  %v632_v30 = vrot.slane %v624_v29, 4  ;;  %1647 = vmatprep.subr.bf16.mxu1 %v1646_v39 }
 0x389   :  { %1649 = vmatpush1.bf16.msra.mxu1 %v1648_v46  ;;  %v709_v18 = vld [vmem:[#allocation2 + $0x40] sm:$0xff] }
 0x38a   :  { %639 = vst [vmem:[#allocation2 + $0x50] sm:$0xf0] %v631_v54  ;;  %640 = vst [vmem:[#allocation2 + $0x58] sm:$0xf0] %v632_v30  ;;  %v664_v19 = vpop.permute.xlu1 %663  ;;  %v729_v62 = vmul.f32 %v709_v18, %v1981_v60 }
 0x38b   :  { %v665_v22 = vsel %vm212_vm5, %v2131_v47, %v664_v19  ;;  %v668_v45 = vsel %vm212_vm5, %v664_v19, %v2139_v11  ;;  %v714_v51 = vld [vmem:[#allocation2 + $0x68] sm:$0xff]  ;;  %v713_v58 = vld [vmem:[#allocation2 + $0x60] sm:$0xff] }
 0x38c   :  { %v675_v12 = vrot.slane %v665_v22, 4  ;;  %v676_v13 = vrot.slane %v668_v45, 4  ;;  %v734_v20 = vmul.f32 %v714_v51, %v1964_v44  ;;  %v733_v21 = vmul.f32 %v713_v58, %v1986_v55 }
 0x38e   :  { %683 = vst [vmem:[#allocation2 + $0x70] sm:$0xf0] %v675_v12  ;;  %684 = vst [vmem:[#allocation2 + $0x78] sm:$0xf0] %v676_v13  ;;  %v688_v32 = vpop.permute.xlu1 %687  ;;  %v1642_v47 = vpack.c.bf16 %v734_v20, %v730_v56  ;;  %v1644_v23 = vpack.c.bf16 %v733_v21, %v729_v62 }
 0x38f   :  { %v694_v11 = vsel %vm241_vm7, %v688_v32, %v2161_v49 }
 0x390   :  { %698 = vst [vmem:[#allocation2 + $0x88] sm:$0xf] %v694_v11  ;;  %1643 = vmatprep.subr.bf16.mxu0 %v1642_v47  ;;  %v1611_v47 = vld [vmem:[%s2612_s2 + $0x4] sm:$0xf] }
 0x391   :  { %1645 = vmatpush1.bf16.msra.mxu0 %v1644_v23  ;;  %v712_v55 = vld [vmem:[#allocation2 + $0x58] sm:$0xff]  ;;  %v711_v52 = vld [vmem:[#allocation2 + $0x50] sm:$0xff] }
 0x392   :  { %v686_v43 = vpop.permute.xlu1 %685  ;;  %v732_v31 = vmul.f32 %v712_v55, %v1995_v14  ;;  %v731_v33 = vmul.f32 %v711_v52, %v2005_v16 }
 0x393   :  { %v695_v60 = vsel %vm241_vm7, %v686_v43, %v688_v32  ;;  %v696_v44 = vsel %vm241_vm7, %v2165_v5, %v686_v43  ;;  %v719_v5 = vld [vmem:[#allocation2 + $0x90] sm:$0xff]  ;;  %v1612_v43 = vld [vmem:[%s2613_s3 + $0x4] sm:$0xf] }
 0x394   :  { %697 = vst [vmem:[#allocation2 + $0x80] sm:$0xf] %v695_v60  ;;  %700 = vst [vmem:[#allocation2 + $0x98] sm:$0xf] %v696_v44  ;;  %v739_v16 = vmul.f32 %v719_v5, %v2041_v42 }
 0x395   :  { %v716_v28 = vld [vmem:[#allocation2 + $0x78] sm:$0xff]  ;;  %v715_v53 = vld [vmem:[#allocation2 + $0x70] sm:$0xff] }
 0x396   :  { %v736_v49 = vmul.f32 %v716_v28, %v2000_v15  ;;  %v735_v26 = vmul.f32 %v715_v53, %v2016_v25  ;;  %v1608_v15 = vld [vmem:[%s2611_s1 + $0x4] sm:$0xf] }
 0x397   :  { %v718_v50 = vld [vmem:[#allocation2 + $0x88] sm:$0xff] }
 0x398   :  { %v738_v36 = vmul.f32 %v718_v50, %v2021_v27  ;;  %v1650_v57 = vpack.c.bf16 %v736_v49, %v732_v31  ;;  %v1652_v37 = vpack.c.bf16 %v735_v26, %v731_v33 }
 0x39a   :  { %754 = vmatprep.subr.mxu0 %v738_v36  ;;  %1651 = vmatprep.subr.bf16.mxu1 %v1650_v57  ;;  %v2259_v57 = vld [vmem:[%s2609_s0 + $0x20] sm:$0xf] }
 0x39b   :  { %1653 = vmatpush1.bf16.msra.mxu1 %v1652_v37  ;;  %v717_v34 = vld [vmem:[#allocation2 + $0x80] sm:$0xff]  ;;  %v720_v38 = vld [vmem:[#allocation2 + $0x98] sm:$0xff] }
 0x39c   :  { %v737_v35 = vmul.f32 %v717_v34, %v2031_v40  ;;  %v740_v14 = vmul.f32 %v720_v38, %v2036_v41 }
 0x39e   :  { %755 = vmatpush1.msra.mxu0 %v737_v35  ;;  %825 = vmatprep.subr.mxu1 %v740_v14  ;;  %v2264_v35 = vld [vmem:[%s2609_s0 + $0x28] sm:$0xf]  ;;  %v2269_v14 = vld [vmem:[%s2609_s0 + $0x30] sm:$0xf] }
 0x39f   :  { %1609 = vmatmul.mubr.msk.f32.vlgmr.msra.gmra.mrb[2].mxu0 %vm291_vm8, %v1608_v15  ;;  %826 = vmatpush1.msra.mxu1 %v739_v16 }
 0x3a0   :  { %1610 = vmatmul.mubr.msk.f32.vlgmr.msra.gmra.mrb[2].mxu1 %vm291_vm8, %v1608_v15  ;;  %1250 = vmatprep.mubr.f32.mxu0 %v1717_v4  ;;  %v2274_v15 = vld [vmem:[%s2609_s0 + $0x38] sm:$0xf] }
 0x3a1   :  { %1321 = vmatprep.mubr.f32.mxu1 %v1717_v4 }
 0x472   :  { %v812_v25 = vpop.f32.mrb[2].mxu0 }
 0x473   :  { %v888_v27 = vmul.f32 %v812_v25, %v812_v25  ;;  %v814_v40 = vpop.f32.mrb[3].mxu0  ;;  %v883_v41 = vpop.f32.mrb[2].mxu1 }
 0x474   :  { %v889_v39 = vmul.f32 %v814_v40, %v814_v40  ;;  %v890_v46 = vmul.f32 %v883_v41, %v883_v41  ;;  %v885_v24 = vpop.f32.mrb[3].mxu1 }
 0x475   :  { %v896_v29 = vrot.slane %v888_v27, 4  ;;  %v891_v42 = vmul.f32 %v885_v24, %v885_v24 }
 0x476   :  { %v897_v54 = vrot.slane %v889_v39, 4  ;;  %v898_v30 = vrot.slane %v890_v46, 4 }
 0x477   :  { %v904_v17 = vsel %vm453_vm9, %v812_v25, %v896_v29  ;;  %v899_v19 = vrot.slane %v891_v42, 4 }
 0x478   :  { %v905_v18 = vsel %vm453_vm9, %v814_v40, %v897_v54  ;;  %v906_v45 = vsel %vm453_vm9, %v883_v41, %v898_v30 }
 0x479   :  { %v908_v22 = vadd.f32 %v905_v18, %v904_v17  ;;  %v907_v51 = vsel %vm453_vm9, %v885_v24, %v899_v19 }
 0x47b   :  { %v909_v4 = vadd.f32 %v908_v22, %v906_v45 }
 0x47d   :  { %v910_v56 = vadd.f32 %v909_v4, %v907_v51 }
 0x47f   :  { %911 = vadd.xlane.f32.xlu1 %v910_v56 }
 0x50c   :  { %v912_v58 = vpop.xlane.xlu1 %911 }
 0x50d   :  { %v913_v62 = vmul.f32 0.001953125, %v912_v58 }
 0x50f   :  { %v914_v12 = vmul.f32 %v913_v62, %v913_v62 }
 0x511   :  { %v916_v13 = vrot.slane %v914_v12, 4 }
 0x513   :  { %v918_v20 = vsub.f32 %v913_v62, %v916_v13 }
 0x515   :  { %v921_v21 = vadd.f32 1e-05, %v918_v20 }
 0x517   :  { %1684 = vrsqrt.f32 %v921_v21 }
 0x521   :  { %v1685_v32 = vpop.eup %1684 }
 0x522   :  { %v924_v23 = vrot.slane %v1685_v32, 4 }
 0x524   :  { %v926_v11 = vmul.f32 %v1611_v47, %v924_v23 }
 0x526   :  { %933 = vperm.xlu0 %1681, %v926_v11   ;;  %v929_v60 = vmul.f32 %v926_v11, %v913_v62 }
 0x528   :  { %v930_v44 = vsub.f32 %v1612_v43, %v929_v60 }
 0x52a   :  { %942 = vperm.xlu0 %1681, %v930_v44  }
 0x5a5   :  { %v934_v55 = vpop.permute.xlu0 %933 }
 0x5a6   :  { %v936_v52 = vmul.f32 %v934_v55, %v812_v25  ;;  %v937_v28 = vmul.f32 %v934_v55, %v814_v40  ;;  %v938_v53 = vmul.f32 %v934_v55, %v883_v41  ;;  %v939_v31 = vmul.f32 %v934_v55, %v885_v24 }
 0x5a9   :  { %v943_v49 = vpop.permute.xlu0 %942 }
 0x5aa   :  { %v945_v33 = vadd.f32 %v943_v49, %v936_v52  ;;  %v946_v26 = vadd.f32 %v943_v49, %v937_v28  ;;  %v947_v50 = vadd.f32 %v943_v49, %v938_v53  ;;  %v948_v36 = vadd.f32 %v943_v49, %v939_v31 }
 0x5ac   :  { %v949_v37 = vmax.f32 %v945_v33, 0.0  ;;  %v950_v5 = vmax.f32 %v946_v26, 0.0  ;;  %v951_v34 = vmax.f32 %v947_v50, 0.0  ;;  %v952_v38 = vmax.f32 %v948_v36, 0.0 }
 0x5ae   :  { %v953_v16 = vmin.f32 %v949_v37, 20.0  ;;  %v954_v25 = vmin.f32 %v950_v5, 20.0  ;;  %v955_v27 = vmin.f32 %v951_v34, 20.0  ;;  %v956_v40 = vmin.f32 %v952_v38, 20.0 }
 0x5b0   :  { %v957_v41 = vadd.f32 %v953_v16, %v2259_v57  ;;  %v958_v39 = vadd.f32 %v954_v25, %v2264_v35  ;;  %v959_v46 = vadd.f32 %v955_v27, %v2269_v14  ;;  %v960_v24 = vadd.f32 %v956_v40, %v2274_v15 }
 0x5b2   :  { %1049 = vst [vmem:[#allocation2 + $0x40] sm:$0xf] %v957_v41  ;;  %1050 = vst [vmem:[#allocation2 + $0x48] sm:$0xf] %v958_v39  ;;  %961 = vrot.lane.b32.xlu1 %v957_v41, %s1712_s28  ;;  %977 = vrot.lane.b32.xlu0 %v957_v41, %s1711_s25 }
 0x5b3   :  { %1051 = vst [vmem:[#allocation2 + $0x50] sm:$0xf] %v959_v46  ;;  %1052 = vst [vmem:[#allocation2 + $0x58] sm:$0xf] %v960_v24 }
 0x5b6   :  { %1011 = vrot.lane.b32.xlu1 %v960_v24, %s1713_s29  ;;  %979 = vrot.lane.b32.xlu0 %v958_v39, %s1711_s25 }
 0x5ba   :  { %1055 = vrot.lane.b32.xlu1 %v958_v39, %s1714_s30  ;;  %1021 = vrot.lane.b32.xlu0 %v957_v41, %s1710_s24 }
 0x5be   :  { %1099 = vrot.lane.b32.xlu1 %v958_v39, %s1715_s6  ;;  %1023 = vrot.lane.b32.xlu0 %v958_v39, %s1710_s24 }
 0x5c2   :  { %965 = vrot.lane.b32.xlu1 %v959_v46, %s1712_s28  ;;  %983 = vrot.lane.b32.xlu0 %v960_v24, %s1711_s25 }
 0x5c6   :  { %1053 = vrot.lane.b32.xlu1 %v957_v41, %s1714_s30  ;;  %1027 = vrot.lane.b32.xlu0 %v960_v24, %s1710_s24 }
 0x5ca   :  { %1083 = vrot.lane.b32.xlu1 %v958_v39, %s1716_s7  ;;  %963 = vrot.lane.b32.xlu0 %v958_v39, %s1712_s28 }
 0x5ce   :  { %1059 = vrot.lane.b32.xlu1 %v960_v24, %s1714_s30  ;;  %1005 = vrot.lane.b32.xlu0 %v957_v41, %s1713_s29 }
 0x5d2   :  { %1103 = vrot.lane.b32.xlu1 %v960_v24, %s1715_s6  ;;  %1007 = vrot.lane.b32.xlu0 %v958_v39, %s1713_s29 }
 0x5d6   :  { %1127 = vrot.lane.b32.xlu1 %v958_v39, %s1718_s8  ;;  %967 = vrot.lane.b32.xlu0 %v960_v24, %s1712_s28 }
 0x5da   :  { %1125 = vrot.lane.b32.xlu1 %v957_v41, %s1718_s8  ;;  %981 = vrot.lane.b32.xlu0 %v959_v46, %s1711_s25 }
 0x5de   :  { %1025 = vrot.lane.b32.xlu0 %v959_v46, %s1710_s24 }
 0x5e2   :  { %1057 = vrot.lane.b32.xlu0 %v959_v46, %s1714_s30 }
 0x5e6   :  { %1101 = vrot.lane.b32.xlu0 %v959_v46, %s1715_s6 }
 0x5ea   :  { %1009 = vrot.lane.b32.xlu0 %v959_v46, %s1713_s29 }
 0x5ee   :  { %1097 = vrot.lane.b32.xlu0 %v957_v41, %s1715_s6 }
 0x5f2   :  { %1085 = vrot.lane.b32.xlu0 %v959_v46, %s1716_s7 }
 0x5f6   :  { %1081 = vrot.lane.b32.xlu0 %v957_v41, %s1716_s7 }
 0x5fa   :  { %1087 = vrot.lane.b32.xlu0 %v960_v24, %s1716_s7 }
 0x5fe   :  { %1129 = vrot.lane.b32.xlu0 %v959_v46, %s1718_s8 }
 0x602   :  { %1131 = vrot.lane.b32.xlu0 %v960_v24, %s1718_s8 }
 0x624   :  { %v962_v29 = vpop.permute.xlu1 %961  ;;  %v978_v42 = vpop.permute.xlu0 %977 }
 0x628   :  { %v2312_v54 = vpop.permute.xlu1 %1011  ;;  %v980_v30 = vpop.permute.xlu0 %979 }
 0x629   :  { %v987_v17 = vsel %vm87_vm1, %v978_v42, %v980_v30 }
 0x62a   :  { %v994_v18 = vrot.slane %v987_v17, 4  ;;  %v1691_v17 = vld [vmem:[%s2610_s4 + $0x28] sm:$0xff] }
 0x62c   :  { %1002 = vst [vmem:[#allocation2 + $0x8] sm:$0xf0] %v994_v18  ;;  %v2316_v19 = vpop.permute.xlu1 %1055  ;;  %v1022_v22 = vpop.permute.xlu0 %1021 }
 0x630   :  { %v2318_v45 = vpop.permute.xlu1 %1099  ;;  %v1024_v4 = vpop.permute.xlu0 %1023 }
 0x631   :  { %v1031_v51 = vsel %vm133_vm0, %v1022_v22, %v1024_v4 }
 0x632   :  { %v1038_v56 = vrot.slane %v1031_v51, 4 }
 0x634   :  { %1046 = vst [vmem:[#allocation2 + $0x28] sm:$0xf0] %v1038_v56  ;;  %v966_v58 = vpop.permute.xlu1 %965  ;;  %v984_v62 = vpop.permute.xlu0 %983 }
 0x635   :  { %v988_v12 = vsel %vm87_vm1, %v984_v62, %v978_v42 }
 0x636   :  { %v993_v13 = vrot.slane %v988_v12, 4 }
 0x638   :  { %1001 = vst [vmem:[#allocation2] sm:$0xf0] %v993_v13  ;;  %v1054_v20 = vpop.permute.xlu1 %1053  ;;  %v1028_v21 = vpop.permute.xlu0 %1027 }
 0x639   :  { %v1063_v32 = vsel %vm166_vm4, %v1054_v20, %v2316_v19  ;;  %v1032_v47 = vsel %vm133_vm0, %v1028_v21, %v1022_v22 }
 0x63a   :  { %v1069_v23 = vrot.slane %v1063_v32, 4  ;;  %v1037_v11 = vrot.slane %v1032_v47, 4  ;;  %v1693_v47 = vld [vmem:[%s2610_s4 + $0x20] sm:$0xff] }
 0x63c   :  { %1077 = vst [vmem:[#allocation2 + $0x40] sm:$0xf0] %v1069_v23  ;;  %1045 = vst [vmem:[#allocation2 + $0x20] sm:$0xf0] %v1037_v11  ;;  %v2329_v43 = vpop.permute.xlu1 %1083  ;;  %v964_v60 = vpop.permute.xlu0 %963 }
 0x63d   :  { %v970_v44 = vsel %vm70_vm2, %v964_v60, %v966_v58  ;;  %v971_v55 = vsel %vm70_vm2, %v962_v29, %v964_v60 }
 0x63e   :  { %974 = vst [vmem:[#allocation2 + $0x8] sm:$0xf] %v971_v55  ;;  %975 = vst [vmem:[#allocation2 + $0x10] sm:$0xf] %v970_v44 }
 0x640   :  { %v1060_v52 = vpop.permute.xlu1 %1059  ;;  %v1006_v28 = vpop.permute.xlu0 %1005 }
 0x641   :  { %v1064_v53 = vsel %vm166_vm4, %v1060_v52, %v1054_v20  ;;  %v1016_v31 = vsel %vm116_vm3, %v2312_v54, %v1006_v28  ;;  %v1692_v20 = vld [vmem:[%s2610_s4] sm:$0xff] }
 0x642   :  { %v1072_v49 = vrot.slane %v1064_v53, 4  ;;  %1017 = vst [vmem:[#allocation2 + $0x20] sm:$0xf] %v1016_v31 }
 0x644   :  { %1080 = vst [vmem:[#allocation2 + $0x58] sm:$0xf0] %v1072_v49  ;;  %v2340_v33 = vpop.permute.xlu1 %1103  ;;  %v1008_v26 = vpop.permute.xlu0 %1007 }
 0x645   :  { %v1015_v50 = vsel %vm116_vm3, %v1006_v28, %v1008_v26  ;;  %v1142_v38 = vld [vmem:[#allocation2 + $0x8] sm:$0xff] }
 0x646   :  { %1018 = vst [vmem:[#allocation2 + $0x28] sm:$0xf] %v1015_v50 }
 0x648   :  { %v2344_v36 = vpop.permute.xlu1 %1127  ;;  %v968_v37 = vpop.permute.xlu0 %967 }
 0x649   :  { %v969_v5 = vsel %vm70_vm2, %v966_v58, %v968_v37  ;;  %v972_v34 = vsel %vm70_vm2, %v968_v37, %v962_v29  ;;  %v1690_v29 = vld [vmem:[%s2610_s4 + $0x8] sm:$0xff]  ;;  %v1145_v22 = vld [vmem:[#allocation2 + $0x20] sm:$0xff] }
 0x64a   :  { %973 = vst [vmem:[#allocation2] sm:$0xf] %v972_v34  ;;  %976 = vst [vmem:[#allocation2 + $0x18] sm:$0xf] %v969_v5  ;;  %v1162_v42 = vmul.f32 %v1690_v29, %v1142_v38  ;;  %v1165_v23 = vmul.f32 %v1693_v47, %v1145_v22  ;;  %v1698_v47 = vld [vmem:[%s2610_s4 + $0x48] sm:$0xff] }
 0x64c   :  { %v2350_v16 = vpop.permute.xlu1 %1125  ;;  %v982_v25 = vpop.permute.xlu0 %981 }
 0x64d   :  { %v1135_v27 = vsel %vm241_vm7, %v2350_v16, %v2344_v36  ;;  %v985_v40 = vsel %vm87_vm1, %v982_v25, %v984_v62  ;;  %v986_v41 = vsel %vm87_vm1, %v980_v30, %v982_v25  ;;  %v1146_v39 = vld [vmem:[#allocation2 + $0x28] sm:$0xff] }
 0x64e   :  { %1137 = vst [vmem:[#allocation2 + $0x80] sm:$0xf] %v1135_v27  ;;  %v995_v46 = vrot.slane %v986_v41, 4  ;;  %v996_v24 = vrot.slane %v985_v40, 4  ;;  %v1166_v18 = vmul.f32 %v1691_v17, %v1146_v39 }
 0x650   :  { %1003 = vst [vmem:[#allocation2 + $0x10] sm:$0xf0] %v995_v46  ;;  %1004 = vst [vmem:[#allocation2 + $0x18] sm:$0xf0] %v996_v24  ;;  %v1026_v51 = vpop.permute.xlu0 %1025  ;;  %v1654_v56 = vpack.c.bf16 %v1166_v18, %v1162_v42  ;;  %v1696_v42 = vld [vmem:[%s2610_s4 + $0x10] sm:$0xff] }
 0x651   :  { %v1029_v30 = vsel %vm133_vm0, %v1026_v51, %v1028_v21  ;;  %v1030_v58 = vsel %vm133_vm0, %v1024_v4, %v1026_v51  ;;  %v1141_v62 = vld [vmem:[#allocation2] sm:$0xff]  ;;  %v1697_v18 = vld [vmem:[%s2610_s4 + $0x30] sm:$0xff] }
 0x652   :  { %v1039_v12 = vrot.slane %v1030_v58, 4  ;;  %v1040_v13 = vrot.slane %v1029_v30, 4  ;;  %1655 = vmatprep.subr.bf16.mxu0 %v1654_v56  ;;  %v1161_v32 = vmul.f32 %v1692_v20, %v1141_v62 }
 0x654   :  { %1047 = vst [vmem:[#allocation2 + $0x30] sm:$0xf0] %v1039_v12  ;;  %1048 = vst [vmem:[#allocation2 + $0x38] sm:$0xf0] %v1040_v13  ;;  %v1058_v21 = vpop.permute.xlu0 %1057  ;;  %v1656_v11 = vpack.c.bf16 %v1165_v23, %v1161_v32 }
 0x655   :  { %v1061_v4 = vsel %vm166_vm4, %v1058_v21, %v1060_v52  ;;  %v1062_v60 = vsel %vm166_vm4, %v2316_v19, %v1058_v21 }
 0x656   :  { %v1070_v44 = vrot.slane %v1062_v60, 4  ;;  %v1071_v55 = vrot.slane %v1061_v4, 4  ;;  %1657 = vmatpush1.bf16.msra.mxu0 %v1656_v11  ;;  %v1149_v11 = vld [vmem:[#allocation2 + $0x40] sm:$0xff] }
 0x657   :  { %v1144_v40 = vld [vmem:[#allocation2 + $0x18] sm:$0xff]  ;;  %v1143_v41 = vld [vmem:[#allocation2 + $0x10] sm:$0xff] }
 0x658   :  { %1078 = vst [vmem:[#allocation2 + $0x48] sm:$0xf0] %v1070_v44  ;;  %1079 = vst [vmem:[#allocation2 + $0x50] sm:$0xf0] %v1071_v55  ;;  %v1102_v28 = vpop.permute.xlu0 %1101  ;;  %v1163_v17 = vmul.f32 %v1696_v42, %v1143_v41  ;;  %v1707_v42 = vld [vmem:[%s2610_s4 + $0x80] sm:$0xff] }
 0x659   :  { %v1105_v53 = vsel %vm212_vm5, %v1102_v28, %v2340_v33  ;;  %v1106_v31 = vsel %vm212_vm5, %v2318_v45, %v1102_v28  ;;  %v1700_v28 = vld [vmem:[%s2610_s4 + $0x40] sm:$0xff] }
 0x65a   :  { %v1114_v49 = vrot.slane %v1106_v31, 4  ;;  %v1115_v52 = vrot.slane %v1105_v53, 4  ;;  %v1169_v53 = vmul.f32 %v1700_v28, %v1149_v11  ;;  %v1701_v31 = vld [vmem:[%s2610_s4 + $0x60] sm:$0xff] }
 0x65c   :  { %1122 = vst [vmem:[#allocation2 + $0x68] sm:$0xf0] %v1114_v49  ;;  %1123 = vst [vmem:[#allocation2 + $0x70] sm:$0xf0] %v1115_v52  ;;  %v1010_v50 = vpop.permute.xlu0 %1009  ;;  %v1152_v52 = vld [vmem:[#allocation2 + $0x58] sm:$0xff] }
 0x65d   :  { %v1013_v19 = vsel %vm116_vm3, %v1010_v50, %v2312_v54  ;;  %v1014_v37 = vsel %vm116_vm3, %v1008_v26, %v1010_v50 }
 0x65e   :  { %1019 = vst [vmem:[#allocation2 + $0x30] sm:$0xf] %v1014_v37  ;;  %1020 = vst [vmem:[#allocation2 + $0x38] sm:$0xf] %v1013_v19 }
 0x65f   :  { %v1150_v62 = vld [vmem:[#allocation2 + $0x48] sm:$0xff]  ;;  %v1151_v50 = vld [vmem:[#allocation2 + $0x50] sm:$0xff] }
 0x660   :  { %v1098_v5 = vpop.permute.xlu0 %1097  ;;  %v1170_v23 = vmul.f32 %v1698_v47, %v1150_v62 }
 0x661   :  { %v1107_v34 = vsel %vm212_vm5, %v1098_v5, %v2318_v45  ;;  %v1108_v38 = vsel %vm212_vm5, %v2340_v33, %v1098_v5  ;;  %v1694_v45 = vld [vmem:[%s2610_s4 + $0x18] sm:$0xff] }
 0x662   :  { %v1113_v25 = vrot.slane %v1107_v34, 4  ;;  %v1116_v27 = vrot.slane %v1108_v38, 4  ;;  %v1164_v24 = vmul.f32 %v1694_v45, %v1144_v40  ;;  %v1695_v33 = vld [vmem:[%s2610_s4 + $0x38] sm:$0xff]  ;;  %v1157_v45 = vld [vmem:[#allocation2 + $0x80] sm:$0xff] }
 0x663   :  { %v1703_v40 = vld [vmem:[%s2610_s4 + $0x78] sm:$0xff] }
 0x664   :  { %1121 = vst [vmem:[#allocation2 + $0x60] sm:$0xf0] %v1113_v25  ;;  %1124 = vst [vmem:[#allocation2 + $0x78] sm:$0xf0] %v1116_v27  ;;  %v1086_v54 = vpop.permute.xlu0 %1085  ;;  %v1702_v25 = vld [vmem:[%s2610_s4 + $0x58] sm:$0xff] }
 0x665   :  { %v1090_v26 = vsel %vm195_vm6, %v2329_v43, %v1086_v54  ;;  %v1148_v39 = vld [vmem:[#allocation2 + $0x38] sm:$0xff]  ;;  %v1147_v46 = vld [vmem:[#allocation2 + $0x30] sm:$0xff]  ;;  %v1172_v27 = vmul.f32 %v1702_v25, %v1152_v52 }
 0x666   :  { %1094 = vst [vmem:[#allocation2 + $0x68] sm:$0xf] %v1090_v26  ;;  %v1168_v29 = vmul.f32 %v1695_v33, %v1148_v39  ;;  %v1167_v22 = vmul.f32 %v1697_v18, %v1147_v46  ;;  %v1706_v33 = vld [vmem:[%s2610_s4 + $0x88] sm:$0xff] }
 0x667   :  { %v1613_v18 = vld [vmem:[%s2611_s1 + $0x8] sm:$0xf] }
 0x668   :  { %v1082_v51 = vpop.permute.xlu0 %1081  ;;  %v1662_v56 = vpack.c.bf16 %v1168_v29, %v1164_v24  ;;  %v1664_v30 = vpack.c.bf16 %v1167_v22, %v1163_v17  ;;  %v1177_v17 = vmul.f32 %v1707_v42, %v1157_v45 }
 0x669   :  { %v1091_v58 = vsel %vm195_vm6, %v1082_v51, %v2329_v43  ;;  %v1699_v43 = vld [vmem:[%s2610_s4 + $0x68] sm:$0xff] }
 0x66a   :  { %1093 = vst [vmem:[#allocation2 + $0x60] sm:$0xf] %v1091_v58  ;;  %1663 = vmatprep.subr.bf16.mxu1 %v1662_v56  ;;  %v1708_v56 = vld [vmem:[%s2610_s4 + $0x98] sm:$0xff]  ;;  %v1709_v58 = vld [vmem:[%s2610_s4 + $0x90] sm:$0xff] }
 0x66b   :  { %1665 = vmatpush1.bf16.msra.mxu1 %v1664_v30 }
 0x66c   :  { %v1088_v12 = vpop.permute.xlu0 %1087 }
 0x66d   :  { %v1089_v13 = vsel %vm195_vm6, %v1086_v54, %v1088_v12  ;;  %v1092_v20 = vsel %vm195_vm6, %v1088_v12, %v1082_v51  ;;  %v1154_v32 = vld [vmem:[#allocation2 + $0x68] sm:$0xff]  ;;  %v1705_v54 = vld [vmem:[%s2610_s4 + $0x70] sm:$0xff] }
 0x66e   :  { %1095 = vst [vmem:[#allocation2 + $0x70] sm:$0xf] %v1089_v13  ;;  %1096 = vst [vmem:[#allocation2 + $0x78] sm:$0xf] %v1092_v20  ;;  %v1174_v21 = vmul.f32 %v1699_v43, %v1154_v32 }
 0x670   :  { %v1130_v4 = vpop.permute.xlu0 %1129  ;;  %v1658_v60 = vpack.c.bf16 %v1174_v21, %v1170_v23 }
 0x671   :  { %v1134_v44 = vsel %vm241_vm7, %v2344_v36, %v1130_v4  ;;  %v1153_v55 = vld [vmem:[#allocation2 + $0x60] sm:$0xff] }
 0x672   :  { %1138 = vst [vmem:[#allocation2 + $0x88] sm:$0xf] %v1134_v44  ;;  %1659 = vmatprep.subr.bf16.mxu0 %v1658_v60  ;;  %v1173_v49 = vmul.f32 %v1701_v31, %v1153_v55 }
 0x674   :  { %v1132_v19 = vpop.permute.xlu0 %1131  ;;  %v1660_v37 = vpack.c.bf16 %v1173_v49, %v1169_v53 }
 0x675   :  { %v1133_v36 = vsel %vm241_vm7, %v1130_v4, %v1132_v19  ;;  %v1136_v5 = vsel %vm241_vm7, %v1132_v19, %v2350_v16  ;;  %v1156_v34 = vld [vmem:[#allocation2 + $0x78] sm:$0xff]  ;;  %v1155_v38 = vld [vmem:[#allocation2 + $0x70] sm:$0xff]  ;;  %v1171_v16 = vmul.f32 %v1704_v6, %v1151_v50  ;;  %v1617_v6 = vld [vmem:[%s2613_s3 + $0x8] sm:$0xf] }
 0x676   :  { %1139 = vst [vmem:[#allocation2 + $0x90] sm:$0xf] %v1133_v36  ;;  %1140 = vst [vmem:[#allocation2 + $0x98] sm:$0xf] %v1136_v5  ;;  %1661 = vmatpush1.bf16.msra.mxu0 %v1660_v37  ;;  %v1176_v41 = vmul.f32 %v1703_v40, %v1156_v34  ;;  %v1175_v26 = vmul.f32 %v1705_v54, %v1155_v38 }
 0x678   :  { %v1666_v39 = vpack.c.bf16 %v1176_v41, %v1172_v27  ;;  %v1668_v46 = vpack.c.bf16 %v1175_v26, %v1171_v16  ;;  %v1616_v27 = vld [vmem:[%s2612_s2 + $0x8] sm:$0xf] }
 0x679   :  { %v1158_v24 = vld [vmem:[#allocation2 + $0x88] sm:$0xff] }
 0x67a   :  { %1667 = vmatprep.subr.bf16.mxu1 %v1666_v39  ;;  %v1178_v29 = vmul.f32 %v1706_v33, %v1158_v24 }
 0x67b   :  { %1669 = vmatpush1.bf16.msra.mxu1 %v1668_v46 }
 0x67c   :  { %1194 = vmatprep.subr.mxu0 %v1178_v29 }
 0x67d   :  { %1195 = vmatpush1.msra.mxu0 %v1177_v17  ;;  %v1160_v22 = vld [vmem:[#allocation2 + $0x98] sm:$0xff]  ;;  %v1159_v51 = vld [vmem:[#allocation2 + $0x90] sm:$0xff] }
 0x67e   :  { %1614 = vmatmul.mubr.msk.f32.vlgmr.msra.gmra.mrb[4].mxu0 %vm291_vm8, %v1613_v18  ;;  %v1180_v30 = vmul.f32 %v1708_v56, %v1160_v22  ;;  %v1179_v62 = vmul.f32 %v1709_v58, %v1159_v51 }
 0x680   :  { %1265 = vmatprep.subr.mxu1 %v1180_v30 }
 0x681   :  { %1266 = vmatpush1.msra.mxu1 %v1179_v62 }
 0x682   :  { %1615 = vmatmul.mubr.msk.f32.vlgmr.msra.gmra.mrb[4].mxu1 %vm291_vm8, %v1613_v18 }
 0x751   :  { %v1252_v12 = vpop.f32.mrb[4].mxu0 }
 0x752   :  { %v1328_v13 = vmul.f32 %v1252_v12, %v1252_v12  ;;  %v1254_v20 = vpop.f32.mrb[5].mxu0 }
 0x753   :  { %v1329_v32 = vmul.f32 %v1254_v20, %v1254_v20 }
 0x754   :  { %v1336_v47 = vrot.slane %v1328_v13, 4 }
 0x755   :  { %v1337_v23 = vrot.slane %v1329_v32, 4  ;;  %v1323_v43 = vpop.f32.mrb[4].mxu1 }
 0x756   :  { %v1344_v21 = vsel %vm453_vm9, %v1252_v12, %v1336_v47  ;;  %v1330_v11 = vmul.f32 %v1323_v43, %v1323_v43  ;;  %v1325_v4 = vpop.f32.mrb[5].mxu1 }
 0x757   :  { %v1345_v60 = vsel %vm453_vm9, %v1254_v20, %v1337_v23  ;;  %v1331_v44 = vmul.f32 %v1325_v4, %v1325_v4 }
 0x758   :  { %v1348_v55 = vadd.f32 %v1345_v60, %v1344_v21  ;;  %v1338_v28 = vrot.slane %v1330_v11, 4 }
 0x759   :  { %v1339_v53 = vrot.slane %v1331_v44, 4 }
 0x75a   :  { %v1346_v31 = vsel %vm453_vm9, %v1323_v43, %v1338_v28 }
 0x75b   :  { %v1349_v49 = vadd.f32 %v1348_v55, %v1346_v31  ;;  %v1347_v52 = vsel %vm453_vm9, %v1325_v4, %v1339_v53 }
 0x75d   :  { %v1350_v50 = vadd.f32 %v1349_v49, %v1347_v52 }
 0x75f   :  { %1351 = vadd.xlane.f32.xlu1 %v1350_v50 }
 0x7ec   :  { %v1352_v19 = vpop.xlane.xlu1 %1351 }
 0x7ed   :  { %v1353_v37 = vmul.f32 0.001953125, %v1352_v19 }
 0x7ef   :  { %v1354_v36 = vmul.f32 %v1353_v37, %v1353_v37 }
 0x7f1   :  { %v1356_v5 = vrot.slane %v1354_v36, 4 }
 0x7f3   :  { %v1358_v34 = vsub.f32 %v1353_v37, %v1356_v5 }
 0x7f5   :  { %v1361_v38 = vadd.f32 1e-05, %v1358_v34 }
 0x7f7   :  { %1686 = vrsqrt.f32 %v1361_v38  ;;  %v1618_v38 = vld [vmem:[%s2612_s2 + $0x4] sm:$0xf] }
 0x801   :  { %v1687_v25 = vpop.eup %1686 }
 0x802   :  { %v1364_v40 = vrot.slane %v1687_v25, 4  ;;  %v1430_v25 = vld [vmem:[%s2612_s2] sm:$0xf] }
 0x804   :  { %v1366_v41 = vmul.f32 %v1616_v27, %v1364_v40  ;;  %v1620_v27 = vld [vmem:[%s2612_s2 + $0x8] sm:$0xf] }
 0x806   :  { %v1369_v16 = vmul.f32 %v1366_v41, %v1353_v37  ;;  %1373 = vperm.xlu0 %1681, %v1366_v41  }
 0x808   :  { %v1370_v54 = vsub.f32 %v1617_v6, %v1369_v16 }
 0x80a   :  { %1382 = vperm.xlu0 %1681, %v1370_v54   ;;  %v1621_v54 = vld [vmem:[%s2613_s3 + $0x8] sm:$0xf] }
 0x885   :  { %v1374_v26 = vpop.permute.xlu0 %1373 }
 0x886   :  { %v1376_v39 = vmul.f32 %v1374_v26, %v1252_v12  ;;  %v1377_v46 = vmul.f32 %v1374_v26, %v1254_v20  ;;  %v1378_v45 = vmul.f32 %v1374_v26, %v1323_v43  ;;  %v1379_v24 = vmul.f32 %v1374_v26, %v1325_v4 }
 0x889   :  { %v1383_v33 = vpop.permute.xlu0 %1382 }
 0x88a   :  { %v1385_v29 = vadd.f32 %v1383_v33, %v1376_v39  ;;  %v1386_v42 = vadd.f32 %v1383_v33, %v1377_v46  ;;  %v1387_v17 = vadd.f32 %v1383_v33, %v1378_v45  ;;  %v1388_v18 = vadd.f32 %v1383_v33, %v1379_v24  ;;  %v1619_v46 = vld [vmem:[%s2613_s3 + $0x4] sm:$0xf]  ;;  %v57_v33 = vld [vmem:[%s2609_s0 + $0x28] sm:$0xf0] }
 0x88b   :  { %v56_v24 = vld [vmem:[%s2609_s0 + $0x20] sm:$0xf0] }
 0x88c   :  { %v1389_v22 = vmax.f32 %v1385_v29, 0.0  ;;  %v1390_v51 = vmax.f32 %v1386_v42, 0.0  ;;  %v1391_v56 = vmax.f32 %v1387_v17, 0.0  ;;  %v1392_v30 = vmax.f32 %v1388_v18, 0.0  ;;  %v58_v29 = vld [vmem:[%s2609_s0 + $0x30] sm:$0xf0] }
 0x88d   :  { %v59_v42 = vld [vmem:[%s2609_s0 + $0x38] sm:$0xf0]  ;;  %v1586_v17 = vmul.f32 2.0, %v56_v24  ;;  %v1587_v18 = vmul.f32 2.0, %v57_v33 }
 0x88e   :  { %v2479_v58 = vmin.f32 %v1389_v22, 20.0  ;;  %v2481_v62 = vmin.f32 %v1390_v51, 20.0  ;;  %v2483_v13 = vmin.f32 %v1391_v56, 20.0  ;;  %v2485_v32 = vmin.f32 %v1392_v30, 20.0 }
 0x88f   :  { %v1588_v22 = vmul.f32 2.0, %v58_v29  ;;  %v1589_v56 = vmul.f32 2.0, %v59_v42 }
 0x890   :  { %v1397_v12 = vmul.f32 %v2479_v58, %v2479_v58  ;;  %v1398_v20 = vmul.f32 %v2481_v62, %v2481_v62  ;;  %v1399_v47 = vmul.f32 %v2483_v13, %v2483_v13  ;;  %v1400_v23 = vmul.f32 %v2485_v32, %v2485_v32 }
 0x892   :  { %v1405_v43 = vrot.slane %v1397_v12, 4  ;;  %v1406_v21 = vrot.slane %v1398_v20, 4  ;;  %v1407_v11 = vrot.slane %v1399_v47, 4  ;;  %v1408_v4 = vrot.slane %v1400_v23, 4  ;;  %v1435_v23 = vld [vmem:[%s2613_s3] sm:$0xf] }
 0x893   :  { %v1590_v12 = vmax.f32 %v1586_v17, 0.0  ;;  %v1591_v20 = vmax.f32 %v1587_v18, 0.0  ;;  %v1592_v47 = vmax.f32 %v1588_v22, 0.0 }
 0x894   :  { %v1413_v60 = vsel %vm453_vm9, %v2479_v58, %v1405_v43  ;;  %v1414_v44 = vsel %vm453_vm9, %v2481_v62, %v1406_v21  ;;  %v1415_v28 = vsel %vm453_vm9, %v2483_v13, %v1407_v11  ;;  %v1416_v31 = vsel %vm453_vm9, %v2485_v32, %v1408_v4 }
 0x895   :  { %v1417_v55 = vadd.f32 %v1414_v44, %v1413_v60  ;;  %v1593_v43 = vmax.f32 %v1589_v56, 0.0  ;;  %v1594_v21 = vmin.f32 %v1590_v12, 20.0  ;;  %v1595_v11 = vmin.f32 %v1591_v20, 20.0 }
 0x896   :  { %v1596_v4 = vmin.f32 %v1592_v47, 20.0 }
 0x897   :  { %v1418_v53 = vadd.f32 %v1417_v55, %v1415_v28  ;;  %v1597_v60 = vmin.f32 %v1593_v43, 20.0  ;;  %1598 = vst [vmem:[%s2614_s5 + $0x20] sm:$0xf0] %v1594_v21  ;;  %1599 = vst [vmem:[%s2614_s5 + $0x28] sm:$0xf0] %v1595_v11 }
 0x898   :  { %1600 = vst [vmem:[%s2614_s5 + $0x30] sm:$0xf0] %v1596_v4 }
 0x899   :  { %v1419_v49 = vadd.f32 %v1418_v53, %v1416_v31  ;;  %1601 = vst [vmem:[%s2614_s5 + $0x38] sm:$0xf0] %v1597_v60 }
 0x89b   :  { %1420 = vadd.xlane.f32.xlu0 %v1419_v49 }
 0x928   :  { %v1421_v52 = vpop.xlane.xlu0 %1420 }
 0x929   :  { %v1422_v50 = vmul.f32 0.001953125, %v1421_v52 }
 0x92b   :  { %v1423_v19 = vmul.f32 %v1422_v50, %v1422_v50 }
 0x92d   :  { %v1425_v37 = vrot.slane %v1423_v19, 4 }
 0x92f   :  { %v1427_v36 = vsub.f32 %v1422_v50, %v1425_v37 }
 0x931   :  { %v1428_v5 = vadd.f32 1e-05, %v1427_v36 }
 0x933   :  { %1688 = vrsqrt.f32 %v1428_v5 }
 0x93d   :  { %v1689_v34 = vpop.eup %1688 }
 0x93e   :  { %v1432_v40 = vrot.slane %v1689_v34, 4 }
 0x940   :  { %v1481_v41 = vmul.f32 %v1618_v38, %v1432_v40  ;;  %v1434_v6 = vmul.f32 %v1432_v40, %v1430_v25  ;;  %v1540_v16 = vmul.f32 %v1620_v27, %v1432_v40 }
 0x942   :  { %1487 = vperm.xlu1 %1680, %v1481_v41   ;;  %1440 = vperm.xlu0 %1681, %v1434_v6   ;;  %v1542_v26 = vmul.f32 %v1540_v16, %v1422_v50  ;;  %v1483_v45 = vmul.f32 %v1481_v41, %v1422_v50  ;;  %v1436_v51 = vmul.f32 %v1434_v6, %v1422_v50 }
 0x944   :  { %v1543_v39 = vsub.f32 %v1621_v54, %v1542_v26  ;;  %v1484_v30 = vsub.f32 %v1619_v46, %v1483_v45  ;;  %v1437_v44 = vsub.f32 %v1435_v23, %v1436_v51 }
 0x946   :  { %1546 = vperm.xlu1 %1680, %v1540_v16   ;;  %1555 = vperm.xlu0 %1681, %v1543_v39  }
 0x94a   :  { %1496 = vperm.xlu1 %1680, %v1484_v30  }
 0x94e   :  { %1449 = vperm.xlu1 %1680, %v1437_v44  }
 0x9c1   :  { %v1488_v55 = vpop.permute.xlu1 %1487  ;;  %v1441_v28 = vpop.permute.xlu0 %1440 }
 0x9c2   :  { %v1490_v19 = vmul.f32 %v1488_v55, %v2479_v58  ;;  %v1491_v37 = vmul.f32 %v1488_v55, %v2481_v62  ;;  %v1492_v36 = vmul.f32 %v1488_v55, %v2483_v13  ;;  %v1493_v5 = vmul.f32 %v1488_v55, %v2485_v32 }
 0x9c3   :  { %v1443_v6 = vmul.f32 %v1441_v28, %v2479_v58  ;;  %v1444_v16 = vmul.f32 %v1441_v28, %v2481_v62  ;;  %v1445_v54 = vmul.f32 %v1441_v28, %v2483_v13  ;;  %v1446_v26 = vmul.f32 %v1441_v28, %v2485_v32 }
 0x9c5   :  { %v1547_v53 = vpop.permute.xlu1 %1546  ;;  %v1556_v34 = vpop.permute.xlu0 %1555 }
 0x9c6   :  { %v1549_v31 = vmul.f32 %v1547_v53, %v2479_v58  ;;  %v1550_v49 = vmul.f32 %v1547_v53, %v2481_v62  ;;  %v1551_v52 = vmul.f32 %v1547_v53, %v2483_v13  ;;  %v1552_v50 = vmul.f32 %v1547_v53, %v2485_v32 }
 0x9c8   :  { %v1558_v38 = vadd.f32 %v1556_v34, %v1549_v31  ;;  %v1559_v25 = vadd.f32 %v1556_v34, %v1550_v49  ;;  %v1560_v27 = vadd.f32 %v1556_v34, %v1551_v52  ;;  %v1561_v40 = vadd.f32 %v1556_v34, %v1552_v50 }
 0x9c9   :  { %v1497_v41 = vpop.permute.xlu1 %1496 }
 0x9ca   :  { %v1562_v39 = vmax.f32 %v1558_v38, 0.0  ;;  %v1563_v46 = vmax.f32 %v1559_v25, 0.0  ;;  %v1564_v45 = vmax.f32 %v1560_v27, 0.0  ;;  %v1565_v24 = vmax.f32 %v1561_v40, 0.0 }
 0x9cb   :  { %v1499_v33 = vadd.f32 %v1497_v41, %v1490_v19  ;;  %v1500_v29 = vadd.f32 %v1497_v41, %v1491_v37  ;;  %v1501_v42 = vadd.f32 %v1497_v41, %v1492_v36  ;;  %v1502_v17 = vadd.f32 %v1497_v41, %v1493_v5 }
 0x9cc   :  { %v1566_v18 = vmin.f32 %v1562_v39, 20.0  ;;  %v1567_v22 = vmin.f32 %v1563_v46, 20.0  ;;  %v1568_v51 = vmin.f32 %v1564_v45, 20.0  ;;  %v1569_v56 = vmin.f32 %v1565_v24, 20.0 }
 0x9cd   :  { %v1503_v30 = vmax.f32 %v1499_v33, 0.0  ;;  %v1504_v58 = vmax.f32 %v1500_v29, 0.0  ;;  %v1505_v12 = vmax.f32 %v1501_v42, 0.0  ;;  %v1506_v62 = vmax.f32 %v1502_v17, 0.0 }
 0x9ce   :  { %v1570_v13 = vadd.f32 %v1566_v18, %v2259_v57  ;;  %v1571_v32 = vadd.f32 %v1567_v22, %v2264_v35  ;;  %v1572_v20 = vadd.f32 %v1568_v51, %v2269_v14  ;;  %v1573_v47 = vadd.f32 %v1569_v56, %v2274_v15  ;;  %v1450_v15 = vpop.permute.xlu1 %1449 }
 0x9cf   :  { %v1507_v23 = vmin.f32 %v1503_v30, 20.0  ;;  %v1508_v43 = vmin.f32 %v1504_v58, 20.0  ;;  %v1509_v21 = vmin.f32 %v1505_v12, 20.0  ;;  %v1510_v11 = vmin.f32 %v1506_v62, 20.0 }
 0x9d0   :  { %v1574_v4 = vmax.f32 %v1570_v13, 0.0  ;;  %v1575_v60 = vmax.f32 %v1571_v32, 0.0  ;;  %v1576_v44 = vmax.f32 %v1572_v20, 0.0  ;;  %v1577_v55 = vmax.f32 %v1573_v47, 0.0 }
 0x9d1   :  { %v1511_v28 = vadd.f32 %v1507_v23, %v509_v7  ;;  %v1512_v57 = vadd.f32 %v1508_v43, %v510_v8  ;;  %v1513_v35 = vadd.f32 %v1509_v21, %v511_v9  ;;  %v1514_v14 = vadd.f32 %v1510_v11, %v512_v10 }
 0x9d2   :  { %v1578_v53 = vmin.f32 %v1574_v4, 20.0  ;;  %v1579_v31 = vmin.f32 %v1575_v60, 20.0  ;;  %v1580_v49 = vmin.f32 %v1576_v44, 20.0  ;;  %v1581_v52 = vmin.f32 %v1577_v55, 20.0 }
 0x9d3   :  { %v1515_v50 = vmax.f32 %v1511_v28, 0.0  ;;  %v1516_v19 = vmax.f32 %v1512_v57, 0.0  ;;  %v1517_v37 = vmax.f32 %v1513_v35, 0.0  ;;  %v1518_v36 = vmax.f32 %v1514_v14, 0.0 }
 0x9d4   :  { %1582 = vst [vmem:[%s2614_s5 + $0x20] sm:$0xf] %v1578_v53  ;;  %1583 = vst [vmem:[%s2614_s5 + $0x28] sm:$0xf] %v1579_v31  ;;  %v1452_v48 = vadd.f32 %v1450_v15, %v1443_v6  ;;  %v1453_v59 = vadd.f32 %v1450_v15, %v1444_v16  ;;  %v1454_v61 = vadd.f32 %v1450_v15, %v1445_v54 }
 0x9d5   :  { %1584 = vst [vmem:[%s2614_s5 + $0x30] sm:$0xf] %v1580_v49  ;;  %1585 = vst [vmem:[%s2614_s5 + $0x38] sm:$0xf] %v1581_v52  ;;  %v1455_v63 = vadd.f32 %v1450_v15, %v1446_v26  ;;  %v1519_v7 = vmin.f32 %v1515_v50, 20.0  ;;  %v1520_v8 = vmin.f32 %v1516_v19, 20.0 }
 0x9d6   :  { %v1521_v9 = vmin.f32 %v1517_v37, 20.0  ;;  %v1522_v10 = vmin.f32 %v1518_v36, 20.0  ;;  %v1456_v5 = vmax.f32 %v1452_v48, 0.0  ;;  %v1457_v34 = vmax.f32 %v1453_v59, 0.0 }
 0x9d7   :  { %v1458_v38 = vmax.f32 %v1454_v61, 0.0  ;;  %v1459_v25 = vmax.f32 %v1455_v63, 0.0  ;;  %v1527_v27 = vrot.slane %v1519_v7, 4  ;;  %v1528_v40 = vrot.slane %v1520_v8, 4 }
 0x9d8   :  { %v1529_v41 = vrot.slane %v1521_v9, 4  ;;  %v1530_v39 = vrot.slane %v1522_v10, 4  ;;  %v1460_v46 = vmin.f32 %v1456_v5, 20.0  ;;  %v1461_v45 = vmin.f32 %v1457_v34, 20.0 }
 0x9d9   :  { %v1462_v24 = vmin.f32 %v1458_v38, 20.0  ;;  %v1463_v33 = vmin.f32 %v1459_v25, 20.0  ;;  %1535 = vst [vmem:[%s2614_s5] sm:$0xf0] %v1527_v27  ;;  %1536 = vst [vmem:[%s2614_s5 + $0x8] sm:$0xf0] %v1528_v40 }
 0x9da   :  { %1537 = vst [vmem:[%s2614_s5 + $0x10] sm:$0xf0] %v1529_v41  ;;  %1538 = vst [vmem:[%s2614_s5 + $0x18] sm:$0xf0] %v1530_v39  ;;  %v1464_v6 = vadd.f32 %v1460_v46, %v1753_v0  ;;  %v1465_v16 = vadd.f32 %v1461_v45, %v1758_v1 }
 0x9db   :  { %v1466_v54 = vadd.f32 %v1462_v24, %v1775_v3  ;;  %v1467_v26 = vadd.f32 %v1463_v33, %v1763_v2 }
 0x9dc   :  { %v1468_v29 = vmax.f32 %v1464_v6, 0.0  ;;  %v1469_v42 = vmax.f32 %v1465_v16, 0.0 }
 0x9dd   :  { %v1470_v17 = vmax.f32 %v1466_v54, 0.0  ;;  %v1471_v18 = vmax.f32 %v1467_v26, 0.0 }
 0x9de   :  { %v1472_v22 = vmin.f32 %v1468_v29, 20.0  ;;  %v1473_v51 = vmin.f32 %v1469_v42, 20.0 }
 0x9df   :  { %v1474_v56 = vmin.f32 %v1470_v17, 20.0  ;;  %v1475_v30 = vmin.f32 %v1471_v18, 20.0 }
 0x9e0   :  { %1476 = vst [vmem:[%s2614_s5] sm:$0xf] %v1472_v22  ;;  %1477 = vst [vmem:[%s2614_s5 + $0x8] sm:$0xf] %v1473_v51 }
 0x9e1   :  { %1478 = vst [vmem:[%s2614_s5 + $0x10] sm:$0xf] %v1474_v56  ;;  %1479 = vst [vmem:[%s2614_s5 + $0x18] sm:$0xf] %v1475_v30 }

</bundles_post_ra>
